<compile_context>
chip_gen: v7x
topology: tpu7x:2x2x1
jax: 0.10.0
libtpu: 0.0.40
codegen_flags: <defaults>
</compile_context>

<pallas_src>
import functools

import jax
import jax.numpy as jnp
from jax.experimental import pallas as pl
from jax.experimental.pallas import tpu as pltpu

# Model dims (fixed by the PyTorch module: Linear expects 450 = 50 * 9)
SEQ_LEN = 101
IN_CH = 4
K1 = 4
C1_OUT = SEQ_LEN            # 101
R1 = 96                     # conv1 positions consumed by pool1 (l = 0..95;
                            # torch drops l = 96, 97 in MaxPool1d(3))
Q1 = R1 // 3                # 32 = pool1 length = conv2 row pitch
K2 = 4
C2_OUT = SEQ_LEN // 2       # 50
L2 = Q1 - K2 + 1            # 29 valid conv2 rows
P2 = L2 // 3                # 9 pooled positions -> 450 dense features
MLP_OUT = 50
OUT_DIM = 1

# Lane-padded channel sizes
C1P = 128
C2P = 128
MLPP = 128


def base_cnn_kernel(xi_ref, w1_ref, b1_ref, w2_ref, b2_ref,
                    wd_ref, bd_ref, wo_ref, bo_ref,
                    out_ref, p1i_ref, c2p_ref):
    tb = out_ref.shape[0]           # batch tile (static)
    n1 = tb * Q1

    # One-time zero of the never-overwritten corner regions of the conv2
    # im2col buffer (rows q > 31-k of lane chunk k).  Even left as garbage
    # those lanes only feed conv2 rows q >= 29, which pool2 (q <= 26) never
    # reads, so this is for determinism, not correctness.
    @pl.when(pl.program_id(0) == 0)
    def _():
        for k in range(1, K2):
            p1i_ref[pl.ds((Q1 - k) * tb, k * tb), pl.ds(k * C1P, C1P)] = (
                jnp.zeros((k * tb, C1P), jnp.bfloat16))

    # ---- conv1 + pool1: three residue matmuls (bf16 operands, f32 acc) ----
    # max over residues, then bias + ReLU once (max / ReLU / +const commute).
    d = jnp.dot(xi_ref[0], w1_ref[...], preferred_element_type=jnp.float32)
    d = jnp.maximum(d, jnp.dot(xi_ref[1], w1_ref[...],
                               preferred_element_type=jnp.float32))
    d = jnp.maximum(d, jnp.dot(xi_ref[2], w1_ref[...],
                               preferred_element_type=jnp.float32))
    p1 = jnp.maximum(d + b1_ref[...], 0.0)                 # (TB*32, 128) f32

    # ---- conv2 im2col: lane chunk k of row (q*TB+b) holds pool1[q+k] ----
    # All stores are contiguous, sublane-aligned, lane-range-aligned slabs.
    for k in range(K2):
        p1i_ref[pl.ds(0, n1 - k * tb), pl.ds(k * C1P, C1P)] = (
            p1[k * tb:n1, :].astype(jnp.bfloat16))

    # ---- conv2: ONE fused (TB*32, 512) @ (512, 128) matmul + bias + ReLU ----
    c2 = jnp.dot(p1i_ref[...], w2_ref[...], preferred_element_type=jnp.float32)
    c2 = jnp.maximum(c2 + b2_ref[...], 0.0)                # (TB*32, 128) f32

    # ---- pool2: max of 3 contiguous (TB,128) slabs per position, packed ----
    # into lane ranges of the dense im2col buffer (flatten comes for free).
    for j in range(P2):
        r0 = 3 * j * tb
        pj = jnp.maximum(jnp.maximum(c2[r0:r0 + tb], c2[r0 + tb:r0 + 2 * tb]),
                         c2[r0 + 2 * tb:r0 + 3 * tb])      # (TB, 128)
        c2p_ref[pl.ds(0, tb), pl.ds(j * C2P, C2P)] = pj.astype(jnp.bfloat16)

    # ---- dense(450->50): ONE (TB, 1152) @ (1152, 128) matmul ----
    h = jnp.dot(c2p_ref[...], wd_ref[...], preferred_element_type=jnp.float32)
    h = jnp.maximum(h + bd_ref[...], 0.0).astype(jnp.bfloat16)   # (TB, 128)

    # TODO(synk): dropout is the identity here (eval/inference mode, no RNG mask).

    # ---- output head 50 -> 1 ----
    out_ref[...] = jnp.dot(h, wo_ref[...],
                           preferred_element_type=jnp.float32) + bo_ref[...]


def _round_up(n, m):
    return (n + m - 1) // m * m


def base_cnn_forward(x, kernel_params, block_batch=None):
    """x: (B, 101, 4) float32 (pre-transpose layout, matches the torch input)."""
    if x.ndim < 3:
        x = x.reshape(-1, SEQ_LEN, IN_CH)
    x = x.astype(jnp.float32)
    B = x.shape[0]

    # Batch tile: 128 keeps per-step VMEM ~16 MiB (bf16 activations), well
    # under the 48 MiB limit below on every gen, and keeps >= 2 grid steps
    # (both v7x TensorCores busy) whenever B > 128.  Sweep 256/512 on
    # v5e/v6e (128 MiB physical VMEM) via block_batch.
    TB = block_batch if block_batch is not None else min(128, _round_up(B, 8))
    TB = _round_up(TB, 8)
    Bp = _round_up(B, TB)
    if Bp != B:
        x = jnp.pad(x, ((0, Bp - B), (0, 0), (0, 0)))
    n_tiles = Bp // TB

    # Wrapper-side im2col, residue-major (pure layout plumbing, no FLOPs):
    #   xi[t*3 + r, q*TB + b, k*4 + ci] = x[t*TB + b, 3*q + r + k, ci]
    # so pool1 / conv2-tap accesses in the kernel are contiguous slabs.
    xw = jnp.concatenate([x[:, k:k + R1, :] for k in range(K1)], axis=-1)
    xi = xw.reshape(n_tiles, TB, Q1, 3, K1 * IN_CH)
    xi = jnp.transpose(xi, (0, 3, 2, 1, 4))
    xi = xi.reshape(n_tiles * 3, Q1 * TB, K1 * IN_CH).astype(jnp.bfloat16)

    (w1f, b1p, w2f, b2p, wdf, bdp, wop, bop) = kernel_params

    def full_spec(shape):
        nd = len(shape)
        return pl.BlockSpec(shape, lambda i, _nd=nd: (0,) * _nd)

    grid_spec = pltpu.PrefetchScalarGridSpec(
        num_scalar_prefetch=0,
        grid=(n_tiles,),
        in_specs=[
            pl.BlockSpec((3, Q1 * TB, K1 * IN_CH), lambda i: (i, 0, 0)),
            full_spec((K1 * IN_CH, C1P)),     # conv1 weight (taps fused into K)
            full_spec((1, C1P)),              # conv1 bias (f32)
            full_spec((K2 * C1P, C2P)),       # conv2 weight, tap-fused K = 512
            full_spec((1, C2P)),              # conv2 bias (f32)
            full_spec((P2 * C2P, MLPP)),      # dense weight, pos-fused K = 1152
            full_spec((1, MLPP)),             # dense bias (f32)
            full_spec((MLPP, OUT_DIM)),       # output weight
            full_spec((1, OUT_DIM)),          # output bias (f32)
        ],
        out_specs=pl.BlockSpec((TB, OUT_DIM), lambda i: (i, 0)),
        scratch_shapes=[
            pltpu.VMEM((TB * Q1, K2 * C1P), jnp.bfloat16),   # conv2 im2col
            pltpu.VMEM((TB, P2 * C2P), jnp.bfloat16),        # dense im2col
        ],
    )

    flops_per_sample = (2 * 3 * Q1 * (K1 * IN_CH) * C1P
                        + 2 * Q1 * (K2 * C1P) * C2P
                        + 2 * (P2 * C2P) * MLPP
                        + 2 * MLPP * OUT_DIM)
    weight_bytes = sum(int(p.size) * p.dtype.itemsize for p in kernel_params)
    cost = pl.CostEstimate(
        flops=int(Bp) * flops_per_sample,
        transcendentals=0,
        bytes_accessed=int(xi.size) * 2 + int(Bp) * OUT_DIM * 4 + weight_bytes)

    out = pl.pallas_call(
        base_cnn_kernel,
        out_shape=jax.ShapeDtypeStruct((Bp, OUT_DIM), jnp.float32),
        grid_spec=grid_spec,
        compiler_params=pltpu.CompilerParams(
            dimension_semantics=("parallel",),
            vmem_limit_bytes=48 * 1024 * 1024),
        cost_estimate=cost,
    )(xi, w1f, b1p, w2f, b2p, wdf, bdp, wop, bop)
    return out[:B]


def prepare_params(torch_params):
    """Torch-layout weights -> kernel layouts (pure glue, done once).

    Matmul operands are stored in bf16 (accumulation is f32 on the MXU);
    biases stay f32.  All channel padding is zero so padded lanes stay
    exactly 0 through bias / ReLU / max / matmul.
    """
    w1, b1, w2, b2, wd, bd, wo, bo = torch_params
    # conv1 (out=101, in=4, k=4) -> fused-tap (k*4+ci, out), lane-padded
    w1f = jnp.transpose(w1, (2, 1, 0)).reshape(K1 * IN_CH, C1_OUT)
    w1f = jnp.pad(w1f, ((0, 0), (0, C1P - C1_OUT))).astype(jnp.bfloat16)
    b1p = jnp.pad(b1, (0, C1P - C1_OUT)).reshape(1, C1P).astype(jnp.float32)
    # conv2 (out=50, in=101, k=4) -> tap-fused (k*128 + c_pad, out_pad) = (512,128)
    w2f = jnp.pad(jnp.transpose(w2, (2, 1, 0)),
                  ((0, 0), (0, C1P - C1_OUT), (0, C2P - C2_OUT)))
    w2f = w2f.reshape(K2 * C1P, C2P).astype(jnp.bfloat16)
    b2p = jnp.pad(b2, (0, C2P - C2_OUT)).reshape(1, C2P).astype(jnp.float32)
    # dense (50, 450), torch flat index c*9+j -> pos-fused (j*128 + c_pad, out_pad)
    wdf = jnp.transpose(wd.reshape(MLP_OUT, C2_OUT, P2), (2, 1, 0))
    wdf = jnp.pad(wdf, ((0, 0), (0, C2P - C2_OUT), (0, MLPP - MLP_OUT)))
    wdf = wdf.reshape(P2 * C2P, MLPP).astype(jnp.bfloat16)
    bdp = jnp.pad(bd, (0, MLPP - MLP_OUT)).reshape(1, MLPP).astype(jnp.float32)
    # output head (1, 50) -> (50_pad, 1)
    wop = jnp.pad(jnp.transpose(wo),
                  ((0, MLPP - MLP_OUT), (0, 0))).astype(jnp.bfloat16)
    bop = bo.reshape(1, OUT_DIM).astype(jnp.float32)
    return (w1f, b1p, w2f, b2p, wdf, bdp, wop, bop)


def init_params(key):
    """Deterministic PyTorch-default-style fan-in uniform init (torch layouts)."""
    ks = jax.random.split(key, 8)

    def u(k, shape, bound):
        return jax.random.uniform(k, shape, jnp.float32, -bound, bound)

    k1b = 1.0 / float(jnp.sqrt(IN_CH * K1))
    w1 = u(ks[0], (C1_OUT, IN_CH, K1), k1b)      # Conv1d (out, in, k)
    b1 = u(ks[1], (C1_OUT,), k1b)
    k2b = 1.0 / float(jnp.sqrt(C1_OUT * K2))
    w2 = u(ks[2], (C2_OUT, C1_OUT, K2), k2b)
    b2 = u(ks[3], (C2_OUT,), k2b)
    kdb = 1.0 / float(jnp.sqrt(C2_OUT * P2))     # 1/sqrt(450)
    wd = u(ks[4], (MLP_OUT, C2_OUT * P2), kdb)   # Linear (out, in)
    bd = u(ks[5], (MLP_OUT,), kdb)
    kob = 1.0 / float(jnp.sqrt(MLP_OUT))
    wo = u(ks[6], (OUT_DIM, MLP_OUT), kob)
    bo = u(ks[7], (OUT_DIM,), kob)
    return (w1, b1, w2, b2, wd, bd, wo, bo)


def reference_forward(x, torch_params):
    """Pure-JAX f32 mirror of the torch forward (eval mode: dropout = identity)."""
    w1, b1, w2, b2, wd, bd, wo, bo = torch_params
    if x.ndim < 3:
        x = x.reshape(-1, SEQ_LEN, IN_CH)
    xt = jnp.transpose(x, (0, 2, 1))                    # (B, 4, 101) NCL

    def conv1d(inp, w, b):
        Cout, _, K = w.shape
        Lo = inp.shape[-1] - K + 1
        out = jnp.zeros((inp.shape[0], Cout, Lo), jnp.float32)
        for k in range(K):
            out = out + jnp.einsum('bcl,oc->bol', inp[:, :, k:k + Lo], w[:, :, k])
        return out + b[None, :, None]

    def maxpool3(a):
        Lo = a.shape[-1] // 3
        return jnp.max(a[..., :Lo * 3].reshape(a.shape[0], a.shape[1], Lo, 3),
                       axis=-1)

    h = jax.nn.relu(conv1d(xt, w1, b1))
    h = maxpool3(h)
    h = jax.nn.relu(conv1d(h, w2, b2))
    h = maxpool3(h)
    h = h.reshape(h.shape[0], -1)                       # (B, 450)
    h = jax.nn.relu(h @ wd.T + bd)
    return h @ wo.T + bo


if __name__ == "__main__":
    key = jax.random.PRNGKey(0)
    pkey, xkey = jax.random.split(key)
    torch_params = init_params(pkey)
    kparams = prepare_params(torch_params)

    B = 2
    x = jax.random.normal(xkey, (B, SEQ_LEN, IN_CH), jnp.float32)

    fwd = jax.jit(functools.partial(base_cnn_forward, kernel_params=kparams))
    out = jax.block_until_ready(fwd(x))
    ref = reference_forward(x, torch_params)

    assert out.shape == (B, OUT_DIM)
    # bf16 matmul operands with f32 accumulation -> slightly looser tolerance.
    assert jnp.allclose(out, ref, rtol=3e-2, atol=3e-2), (out, ref)
    print("KERNEL_OK")
</pallas_src>

<mosaic_0001>
module attributes {stable_mosaic.version = 11 : i64} {
  func.func @base_cnn_kernel(%arg0: i32, %arg1: memref<3x256x16xbf16, #tpu.memory_space<vmem>>, %arg2: memref<16x128xbf16, #tpu.memory_space<vmem>>, %arg3: memref<1x128xf32, #tpu.memory_space<vmem>>, %arg4: memref<512x128xbf16, #tpu.memory_space<vmem>>, %arg5: memref<1x128xf32, #tpu.memory_space<vmem>>, %arg6: memref<1152x128xbf16, #tpu.memory_space<vmem>>, %arg7: memref<1x128xf32, #tpu.memory_space<vmem>>, %arg8: memref<128x1xbf16, #tpu.memory_space<vmem>>, %arg9: memref<1x1xf32, #tpu.memory_space<vmem>>, %arg10: memref<8x1xf32, #tpu.memory_space<vmem>>, %arg11: memref<256x512xbf16, #tpu.memory_space<vmem>>, %arg12: memref<8x1152xbf16, #tpu.memory_space<vmem>>) attributes {dimension_semantics = [#tpu.dimension_semantics<parallel>], iteration_bounds = array<i64: 1>, scalar_prefetch = 0 : i64, scratch_operands = 2 : i64, tpu.core_type = #tpu.core_type<tc>, window_params = [{transform_indices = @transform_0, window_bounds = array<i64: 3, 256, 16>}, {pipeline_mode = #tpu.pipeline_mode<synchronous>, transform_indices = @transform_1, window_bounds = array<i64: 16, 128>}, {pipeline_mode = #tpu.pipeline_mode<synchronous>, transform_indices = @transform_2, window_bounds = array<i64: 1, 128>}, {pipeline_mode = #tpu.pipeline_mode<synchronous>, transform_indices = @transform_3, window_bounds = array<i64: 512, 128>}, {pipeline_mode = #tpu.pipeline_mode<synchronous>, transform_indices = @transform_4, window_bounds = array<i64: 1, 128>}, {pipeline_mode = #tpu.pipeline_mode<synchronous>, transform_indices = @transform_5, window_bounds = array<i64: 1152, 128>}, {pipeline_mode = #tpu.pipeline_mode<synchronous>, transform_indices = @transform_6, window_bounds = array<i64: 1, 128>}, {pipeline_mode = #tpu.pipeline_mode<synchronous>, transform_indices = @transform_7, window_bounds = array<i64: 128, 1>}, {pipeline_mode = #tpu.pipeline_mode<synchronous>, transform_indices = @transform_8, window_bounds = array<i64: 1, 1>}, {transform_indices = @transform_9, window_bounds = array<i64: 8, 1>}]} {
    %c0_i32 = arith.constant 0 : i32
    %0 = arith.cmpi eq, %arg0, %c0_i32 : i32
    %1 = arith.extui %0 : i1 to i32
    %c0_i32_0 = arith.constant 0 : i32
    %2 = arith.cmpi ne, %1, %c0_i32_0 : i32
    scf.if %2 {
      %cst_59 = arith.constant 0.000000e+00 : bf16
      %119 = vector.broadcast %cst_59 : bf16 to vector<8x128xbf16>
      %c248 = arith.constant 248 : index
      %c128_60 = arith.constant 128 : index
      %120 = vector.load %arg11[%c248, %c128_60] : memref<256x512xbf16, #tpu.memory_space<vmem>>, vector<8x128xbf16>
      tpu.vector_store %arg11[%c248, %c128_60], %119 {strides = array<i32>} : memref<256x512xbf16, #tpu.memory_space<vmem>>, vector<8x128xbf16>,
      %cst_61 = arith.constant 0.000000e+00 : bf16
      %121 = vector.broadcast %cst_61 : bf16 to vector<16x128xbf16>
      %c240 = arith.constant 240 : index
      %c256_62 = arith.constant 256 : index
      %122 = vector.load %arg11[%c240, %c256_62] : memref<256x512xbf16, #tpu.memory_space<vmem>>, vector<16x128xbf16>
      tpu.vector_store %arg11[%c240, %c256_62], %121 {strides = array<i32>} : memref<256x512xbf16, #tpu.memory_space<vmem>>, vector<16x128xbf16>,
      %cst_63 = arith.constant 0.000000e+00 : bf16
      %123 = vector.broadcast %cst_63 : bf16 to vector<24x128xbf16>
      %c232 = arith.constant 232 : index
      %c384_64 = arith.constant 384 : index
      %124 = vector.load %arg11[%c232, %c384_64] : memref<256x512xbf16, #tpu.memory_space<vmem>>, vector<24x128xbf16>
      tpu.vector_store %arg11[%c232, %c384_64], %123 {strides = array<i32>} : memref<256x512xbf16, #tpu.memory_space<vmem>>, vector<24x128xbf16>,
    } else {
    }
    %c0 = arith.constant 0 : index
    %c0_1 = arith.constant 0 : index
    %c0_2 = arith.constant 0 : index
    %3 = vector.load %arg1[%c0, %c0_1, %c0_2] : memref<3x256x16xbf16, #tpu.memory_space<vmem>>, vector<1x256x16xbf16>
    %4 = vector.shape_cast %3 : vector<1x256x16xbf16> to vector<256x16xbf16>
    %c0_3 = arith.constant 0 : index
    %c0_4 = arith.constant 0 : index
    %5 = vector.load %arg2[%c0_3, %c0_4] : memref<16x128xbf16, #tpu.memory_space<vmem>>, vector<16x128xbf16>
    %cst = arith.constant dense<0.000000e+00> : vector<256x128xf32>
    %6 = tpu.matmul %4, %5, %cst {dimension_numbers = #tpu.dot_dimension_numbers<[1], [0], [0], [1], [0, 0, 1, 1], [], []>} : vector<256x16xbf16>, vector<16x128xbf16>, vector<256x128xf32> -> vector<256x128xf32>
    %c1 = arith.constant 1 : index
    %c0_5 = arith.constant 0 : index
    %c0_6 = arith.constant 0 : index
    %7 = vector.load %arg1[%c1, %c0_5, %c0_6] : memref<3x256x16xbf16, #tpu.memory_space<vmem>>, vector<1x256x16xbf16>
    %8 = vector.shape_cast %7 : vector<1x256x16xbf16> to vector<256x16xbf16>
    %c0_7 = arith.constant 0 : index
    %c0_8 = arith.constant 0 : index
    %9 = vector.load %arg2[%c0_7, %c0_8] : memref<16x128xbf16, #tpu.memory_space<vmem>>, vector<16x128xbf16>
    %cst_9 = arith.constant dense<0.000000e+00> : vector<256x128xf32>
    %10 = tpu.matmul %8, %9, %cst_9 {dimension_numbers = #tpu.dot_dimension_numbers<[1], [0], [0], [1], [0, 0, 1, 1], [], []>} : vector<256x16xbf16>, vector<16x128xbf16>, vector<256x128xf32> -> vector<256x128xf32>
    %11 = arith.maximumf %6, %10 : vector<256x128xf32>
    %c2 = arith.constant 2 : index
    %c0_10 = arith.constant 0 : index
    %c0_11 = arith.constant 0 : index
    %12 = vector.load %arg1[%c2, %c0_10, %c0_11] : memref<3x256x16xbf16, #tpu.memory_space<vmem>>, vector<1x256x16xbf16>
    %13 = vector.shape_cast %12 : vector<1x256x16xbf16> to vector<256x16xbf16>
    %c0_12 = arith.constant 0 : index
    %c0_13 = arith.constant 0 : index
    %14 = vector.load %arg2[%c0_12, %c0_13] : memref<16x128xbf16, #tpu.memory_space<vmem>>, vector<16x128xbf16>
    %cst_14 = arith.constant dense<0.000000e+00> : vector<256x128xf32>
    %15 = tpu.matmul %13, %14, %cst_14 {dimension_numbers = #tpu.dot_dimension_numbers<[1], [0], [0], [1], [0, 0, 1, 1], [], []>} : vector<256x16xbf16>, vector<16x128xbf16>, vector<256x128xf32> -> vector<256x128xf32>
    %16 = arith.maximumf %11, %15 : vector<256x128xf32>
    %c0_15 = arith.constant 0 : index
    %c0_16 = arith.constant 0 : index
    %17 = vector.load %arg3[%c0_15, %c0_16] : memref<1x128xf32, #tpu.memory_space<vmem>>, vector<1x128xf32>
    %18 = vector.broadcast %17 : vector<1x128xf32> to vector<256x128xf32>
    %19 = arith.addf %16, %18 : vector<256x128xf32>
    %cst_17 = arith.constant 0.000000e+00 : f32
    %20 = vector.broadcast %cst_17 : f32 to vector<256x128xf32>
    %21 = arith.maximumf %19, %20 : vector<256x128xf32>
    %22 = arith.truncf %21 : vector<256x128xf32> to vector<256x128xbf16>
    %c0_18 = arith.constant 0 : index
    %c0_19 = arith.constant 0 : index
    %23 = vector.load %arg11[%c0_18, %c0_19] : memref<256x512xbf16, #tpu.memory_space<vmem>>, vector<256x128xbf16>
    tpu.vector_store %arg11[%c0_18, %c0_19], %22 {strides = array<i32>} : memref<256x512xbf16, #tpu.memory_space<vmem>>, vector<256x128xbf16>,
    %24 = vector.extract_strided_slice %21 {offsets = [8, 0], sizes = [248, 128], strides = [1, 1]} : vector<256x128xf32> to vector<248x128xf32>
    %25 = arith.truncf %24 : vector<248x128xf32> to vector<248x128xbf16>
    %c0_20 = arith.constant 0 : index
    %c128 = arith.constant 128 : index
    %26 = vector.load %arg11[%c0_20, %c128] : memref<256x512xbf16, #tpu.memory_space<vmem>>, vector<248x128xbf16>
    tpu.vector_store %arg11[%c0_20, %c128], %25 {strides = array<i32>} : memref<256x512xbf16, #tpu.memory_space<vmem>>, vector<248x128xbf16>,
    %27 = vector.extract_strided_slice %21 {offsets = [16, 0], sizes = [240, 128], strides = [1, 1]} : vector<256x128xf32> to vector<240x128xf32>
    %28 = arith.truncf %27 : vector<240x128xf32> to vector<240x128xbf16>
    %c0_21 = arith.constant 0 : index
    %c256 = arith.constant 256 : index
    %29 = vector.load %arg11[%c0_21, %c256] : memref<256x512xbf16, #tpu.memory_space<vmem>>, vector<240x128xbf16>
    tpu.vector_store %arg11[%c0_21, %c256], %28 {strides = array<i32>} : memref<256x512xbf16, #tpu.memory_space<vmem>>, vector<240x128xbf16>,
    %30 = vector.extract_strided_slice %21 {offsets = [24, 0], sizes = [232, 128], strides = [1, 1]} : vector<256x128xf32> to vector<232x128xf32>
    %31 = arith.truncf %30 : vector<232x128xf32> to vector<232x128xbf16>
    %c0_22 = arith.constant 0 : index
    %c384 = arith.constant 384 : index
    %32 = vector.load %arg11[%c0_22, %c384] : memref<256x512xbf16, #tpu.memory_space<vmem>>, vector<232x128xbf16>
    tpu.vector_store %arg11[%c0_22, %c384], %31 {strides = array<i32>} : memref<256x512xbf16, #tpu.memory_space<vmem>>, vector<232x128xbf16>,
    %c0_23 = arith.constant 0 : index
    %c0_24 = arith.constant 0 : index
    %33 = vector.load %arg11[%c0_23, %c0_24] : memref<256x512xbf16, #tpu.memory_space<vmem>>, vector<256x512xbf16>
    %c0_25 = arith.constant 0 : index
    %c0_26 = arith.constant 0 : index
    %34 = vector.load %arg4[%c0_25, %c0_26] : memref<512x128xbf16, #tpu.memory_space<vmem>>, vector<512x128xbf16>
    %cst_27 = arith.constant dense<0.000000e+00> : vector<256x128xf32>
    %35 = tpu.matmul %33, %34, %cst_27 {dimension_numbers = #tpu.dot_dimension_numbers<[1], [0], [0], [1], [0, 0, 1, 1], [], []>} : vector<256x512xbf16>, vector<512x128xbf16>, vector<256x128xf32> -> vector<256x128xf32>
    %c0_28 = arith.constant 0 : index
    %c0_29 = arith.constant 0 : index
    %36 = vector.load %arg5[%c0_28, %c0_29] : memref<1x128xf32, #tpu.memory_space<vmem>>, vector<1x128xf32>
    %37 = vector.broadcast %36 : vector<1x128xf32> to vector<256x128xf32>
    %38 = arith.addf %35, %37 : vector<256x128xf32>
    %cst_30 = arith.constant 0.000000e+00 : f32
    %39 = vector.broadcast %cst_30 : f32 to vector<256x128xf32>
    %40 = arith.maximumf %38, %39 : vector<256x128xf32>
    %41 = vector.extract_strided_slice %40 {offsets = [0, 0], sizes = [8, 128], strides = [1, 1]} : vector<256x128xf32> to vector<8x128xf32>
    %42 = vector.extract_strided_slice %40 {offsets = [8, 0], sizes = [8, 128], strides = [1, 1]} : vector<256x128xf32> to vector<8x128xf32>
    %43 = arith.maximumf %41, %42 : vector<8x128xf32>
    %44 = vector.extract_strided_slice %40 {offsets = [16, 0], sizes = [8, 128], strides = [1, 1]} : vector<256x128xf32> to vector<8x128xf32>
    %45 = arith.maximumf %43, %44 : vector<8x128xf32>
    %46 = arith.truncf %45 : vector<8x128xf32> to vector<8x128xbf16>
    %c0_31 = arith.constant 0 : index
    %c0_32 = arith.constant 0 : index
    %47 = vector.load %arg12[%c0_31, %c0_32] : memref<8x1152xbf16, #tpu.memory_space<vmem>>, vector<8x128xbf16>
    tpu.vector_store %arg12[%c0_31, %c0_32], %46 {strides = array<i32>} : memref<8x1152xbf16, #tpu.memory_space<vmem>>, vector<8x128xbf16>,
    %48 = vector.extract_strided_slice %40 {offsets = [24, 0], sizes = [8, 128], strides = [1, 1]} : vector<256x128xf32> to vector<8x128xf32>
    %49 = vector.extract_strided_slice %40 {offsets = [32, 0], sizes = [8, 128], strides = [1, 1]} : vector<256x128xf32> to vector<8x128xf32>
    %50 = arith.maximumf %48, %49 : vector<8x128xf32>
    %51 = vector.extract_strided_slice %40 {offsets = [40, 0], sizes = [8, 128], strides = [1, 1]} : vector<256x128xf32> to vector<8x128xf32>
    %52 = arith.maximumf %50, %51 : vector<8x128xf32>
    %53 = arith.truncf %52 : vector<8x128xf32> to vector<8x128xbf16>
    %c0_33 = arith.constant 0 : index
    %c128_34 = arith.constant 128 : index
    %54 = vector.load %arg12[%c0_33, %c128_34] : memref<8x1152xbf16, #tpu.memory_space<vmem>>, vector<8x128xbf16>
    tpu.vector_store %arg12[%c0_33, %c128_34], %53 {strides = array<i32>} : memref<8x1152xbf16, #tpu.memory_space<vmem>>, vector<8x128xbf16>,
    %55 = vector.extract_strided_slice %40 {offsets = [48, 0], sizes = [8, 128], strides = [1, 1]} : vector<256x128xf32> to vector<8x128xf32>
    %56 = vector.extract_strided_slice %40 {offsets = [56, 0], sizes = [8, 128], strides = [1, 1]} : vector<256x128xf32> to vector<8x128xf32>
    %57 = arith.maximumf %55, %56 : vector<8x128xf32>
    %58 = vector.extract_strided_slice %40 {offsets = [64, 0], sizes = [8, 128], strides = [1, 1]} : vector<256x128xf32> to vector<8x128xf32>
    %59 = arith.maximumf %57, %58 : vector<8x128xf32>
    %60 = arith.truncf %59 : vector<8x128xf32> to vector<8x128xbf16>
    %c0_35 = arith.constant 0 : index
    %c256_36 = arith.constant 256 : index
    %61 = vector.load %arg12[%c0_35, %c256_36] : memref<8x1152xbf16, #tpu.memory_space<vmem>>, vector<8x128xbf16>
    tpu.vector_store %arg12[%c0_35, %c256_36], %60 {strides = array<i32>} : memref<8x1152xbf16, #tpu.memory_space<vmem>>, vector<8x128xbf16>,
    %62 = vector.extract_strided_slice %40 {offsets = [72, 0], sizes = [8, 128], strides = [1, 1]} : vector<256x128xf32> to vector<8x128xf32>
    %63 = vector.extract_strided_slice %40 {offsets = [80, 0], sizes = [8, 128], strides = [1, 1]} : vector<256x128xf32> to vector<8x128xf32>
    %64 = arith.maximumf %62, %63 : vector<8x128xf32>
    %65 = vector.extract_strided_slice %40 {offsets = [88, 0], sizes = [8, 128], strides = [1, 1]} : vector<256x128xf32> to vector<8x128xf32>
    %66 = arith.maximumf %64, %65 : vector<8x128xf32>
    %67 = arith.truncf %66 : vector<8x128xf32> to vector<8x128xbf16>
    %c0_37 = arith.constant 0 : index
    %c384_38 = arith.constant 384 : index
    %68 = vector.load %arg12[%c0_37, %c384_38] : memref<8x1152xbf16, #tpu.memory_space<vmem>>, vector<8x128xbf16>
    tpu.vector_store %arg12[%c0_37, %c384_38], %67 {strides = array<i32>} : memref<8x1152xbf16, #tpu.memory_space<vmem>>, vector<8x128xbf16>,
    %69 = vector.extract_strided_slice %40 {offsets = [96, 0], sizes = [8, 128], strides = [1, 1]} : vector<256x128xf32> to vector<8x128xf32>
    %70 = vector.extract_strided_slice %40 {offsets = [104, 0], sizes = [8, 128], strides = [1, 1]} : vector<256x128xf32> to vector<8x128xf32>
    %71 = arith.maximumf %69, %70 : vector<8x128xf32>
    %72 = vector.extract_strided_slice %40 {offsets = [112, 0], sizes = [8, 128], strides = [1, 1]} : vector<256x128xf32> to vector<8x128xf32>
    %73 = arith.maximumf %71, %72 : vector<8x128xf32>
    %74 = arith.truncf %73 : vector<8x128xf32> to vector<8x128xbf16>
    %c0_39 = arith.constant 0 : index
    %c512 = arith.constant 512 : index
    %75 = vector.load %arg12[%c0_39, %c512] : memref<8x1152xbf16, #tpu.memory_space<vmem>>, vector<8x128xbf16>
    tpu.vector_store %arg12[%c0_39, %c512], %74 {strides = array<i32>} : memref<8x1152xbf16, #tpu.memory_space<vmem>>, vector<8x128xbf16>,
    %76 = vector.extract_strided_slice %40 {offsets = [120, 0], sizes = [8, 128], strides = [1, 1]} : vector<256x128xf32> to vector<8x128xf32>
    %77 = vector.extract_strided_slice %40 {offsets = [128, 0], sizes = [8, 128], strides = [1, 1]} : vector<256x128xf32> to vector<8x128xf32>
    %78 = arith.maximumf %76, %77 : vector<8x128xf32>
    %79 = vector.extract_strided_slice %40 {offsets = [136, 0], sizes = [8, 128], strides = [1, 1]} : vector<256x128xf32> to vector<8x128xf32>
    %80 = arith.maximumf %78, %79 : vector<8x128xf32>
    %81 = arith.truncf %80 : vector<8x128xf32> to vector<8x128xbf16>
    %c0_40 = arith.constant 0 : index
    %c640 = arith.constant 640 : index
    %82 = vector.load %arg12[%c0_40, %c640] : memref<8x1152xbf16, #tpu.memory_space<vmem>>, vector<8x128xbf16>
    tpu.vector_store %arg12[%c0_40, %c640], %81 {strides = array<i32>} : memref<8x1152xbf16, #tpu.memory_space<vmem>>, vector<8x128xbf16>,
    %83 = vector.extract_strided_slice %40 {offsets = [144, 0], sizes = [8, 128], strides = [1, 1]} : vector<256x128xf32> to vector<8x128xf32>
    %84 = vector.extract_strided_slice %40 {offsets = [152, 0], sizes = [8, 128], strides = [1, 1]} : vector<256x128xf32> to vector<8x128xf32>
    %85 = arith.maximumf %83, %84 : vector<8x128xf32>
    %86 = vector.extract_strided_slice %40 {offsets = [160, 0], sizes = [8, 128], strides = [1, 1]} : vector<256x128xf32> to vector<8x128xf32>
    %87 = arith.maximumf %85, %86 : vector<8x128xf32>
    %88 = arith.truncf %87 : vector<8x128xf32> to vector<8x128xbf16>
    %c0_41 = arith.constant 0 : index
    %c768 = arith.constant 768 : index
    %89 = vector.load %arg12[%c0_41, %c768] : memref<8x1152xbf16, #tpu.memory_space<vmem>>, vector<8x128xbf16>
    tpu.vector_store %arg12[%c0_41, %c768], %88 {strides = array<i32>} : memref<8x1152xbf16, #tpu.memory_space<vmem>>, vector<8x128xbf16>,
    %90 = vector.extract_strided_slice %40 {offsets = [168, 0], sizes = [8, 128], strides = [1, 1]} : vector<256x128xf32> to vector<8x128xf32>
    %91 = vector.extract_strided_slice %40 {offsets = [176, 0], sizes = [8, 128], strides = [1, 1]} : vector<256x128xf32> to vector<8x128xf32>
    %92 = arith.maximumf %90, %91 : vector<8x128xf32>
    %93 = vector.extract_strided_slice %40 {offsets = [184, 0], sizes = [8, 128], strides = [1, 1]} : vector<256x128xf32> to vector<8x128xf32>
    %94 = arith.maximumf %92, %93 : vector<8x128xf32>
    %95 = arith.truncf %94 : vector<8x128xf32> to vector<8x128xbf16>
    %c0_42 = arith.constant 0 : index
    %c896 = arith.constant 896 : index
    %96 = vector.load %arg12[%c0_42, %c896] : memref<8x1152xbf16, #tpu.memory_space<vmem>>, vector<8x128xbf16>
    tpu.vector_store %arg12[%c0_42, %c896], %95 {strides = array<i32>} : memref<8x1152xbf16, #tpu.memory_space<vmem>>, vector<8x128xbf16>,
    %97 = vector.extract_strided_slice %40 {offsets = [192, 0], sizes = [8, 128], strides = [1, 1]} : vector<256x128xf32> to vector<8x128xf32>
    %98 = vector.extract_strided_slice %40 {offsets = [200, 0], sizes = [8, 128], strides = [1, 1]} : vector<256x128xf32> to vector<8x128xf32>
    %99 = arith.maximumf %97, %98 : vector<8x128xf32>
    %100 = vector.extract_strided_slice %40 {offsets = [208, 0], sizes = [8, 128], strides = [1, 1]} : vector<256x128xf32> to vector<8x128xf32>
    %101 = arith.maximumf %99, %100 : vector<8x128xf32>
    %102 = arith.truncf %101 : vector<8x128xf32> to vector<8x128xbf16>
    %c0_43 = arith.constant 0 : index
    %c1024 = arith.constant 1024 : index
    %103 = vector.load %arg12[%c0_43, %c1024] : memref<8x1152xbf16, #tpu.memory_space<vmem>>, vector<8x128xbf16>
    tpu.vector_store %arg12[%c0_43, %c1024], %102 {strides = array<i32>} : memref<8x1152xbf16, #tpu.memory_space<vmem>>, vector<8x128xbf16>,
    %c0_44 = arith.constant 0 : index
    %c0_45 = arith.constant 0 : index
    %104 = vector.load %arg12[%c0_44, %c0_45] : memref<8x1152xbf16, #tpu.memory_space<vmem>>, vector<8x1152xbf16>
    %c0_46 = arith.constant 0 : index
    %c0_47 = arith.constant 0 : index
    %105 = vector.load %arg6[%c0_46, %c0_47] : memref<1152x128xbf16, #tpu.memory_space<vmem>>, vector<1152x128xbf16>
    %cst_48 = arith.constant dense<0.000000e+00> : vector<8x128xf32>
    %106 = tpu.matmul %104, %105, %cst_48 {dimension_numbers = #tpu.dot_dimension_numbers<[1], [0], [0], [1], [0, 0, 1, 1], [], []>} : vector<8x1152xbf16>, vector<1152x128xbf16>, vector<8x128xf32> -> vector<8x128xf32>
    %c0_49 = arith.constant 0 : index
    %c0_50 = arith.constant 0 : index
    %107 = vector.load %arg7[%c0_49, %c0_50] : memref<1x128xf32, #tpu.memory_space<vmem>>, vector<1x128xf32>
    %108 = vector.broadcast %107 : vector<1x128xf32> to vector<8x128xf32>
    %109 = arith.addf %106, %108 : vector<8x128xf32>
    %cst_51 = arith.constant 0.000000e+00 : f32
    %110 = vector.broadcast %cst_51 : f32 to vector<8x128xf32>
    %111 = arith.maximumf %109, %110 : vector<8x128xf32>
    %112 = arith.truncf %111 : vector<8x128xf32> to vector<8x128xbf16>
    %c0_52 = arith.constant 0 : index
    %c0_53 = arith.constant 0 : index
    %113 = vector.load %arg8[%c0_52, %c0_53] : memref<128x1xbf16, #tpu.memory_space<vmem>>, vector<128x1xbf16>
    %cst_54 = arith.constant dense<0.000000e+00> : vector<8x1xf32>
    %114 = tpu.matmul %112, %113, %cst_54 {dimension_numbers = #tpu.dot_dimension_numbers<[1], [0], [0], [1], [0, 0, 1, 1], [], []>} : vector<8x128xbf16>, vector<128x1xbf16>, vector<8x1xf32> -> vector<8x1xf32>
    %c0_55 = arith.constant 0 : index
    %c0_56 = arith.constant 0 : index
    %115 = vector.load %arg9[%c0_55, %c0_56] : memref<1x1xf32, #tpu.memory_space<vmem>>, vector<1x1xf32>
    %116 = vector.broadcast %115 : vector<1x1xf32> to vector<8x1xf32>
    %117 = arith.addf %114, %116 : vector<8x1xf32>
    %c0_57 = arith.constant 0 : index
    %c0_58 = arith.constant 0 : index
    %118 = vector.load %arg10[%c0_57, %c0_58] : memref<8x1xf32, #tpu.memory_space<vmem>>, vector<8x1xf32>
    tpu.vector_store %arg10[%c0_57, %c0_58], %117 {strides = array<i32>} : memref<8x1xf32, #tpu.memory_space<vmem>>, vector<8x1xf32>,
    return
  }
  func.func @transform_0(%arg0: i32) -> (i32, i32, i32) {
    %c0_i32 = arith.constant 0 : i32
    %c0_i32_0 = arith.constant 0 : i32
    %c0_i32_1 = arith.constant 0 : i32
    return %arg0, %c0_i32, %c0_i32_0 : i32, i32, i32
  }
  func.func @transform_1(%arg0: i32) -> (i32, i32) {
    %c0_i32 = arith.constant 0 : i32
    %c0_i32_0 = arith.constant 0 : i32
    %c0_i32_1 = arith.constant 0 : i32
    return %c0_i32, %c0_i32_0 : i32, i32
  }
  func.func @transform_2(%arg0: i32) -> (i32, i32) {
    %c0_i32 = arith.constant 0 : i32
    %c0_i32_0 = arith.constant 0 : i32
    %c0_i32_1 = arith.constant 0 : i32
    return %c0_i32, %c0_i32_0 : i32, i32
  }
  func.func @transform_3(%arg0: i32) -> (i32, i32) {
    %c0_i32 = arith.constant 0 : i32
    %c0_i32_0 = arith.constant 0 : i32
    %c0_i32_1 = arith.constant 0 : i32
    return %c0_i32, %c0_i32_0 : i32, i32
  }
  func.func @transform_4(%arg0: i32) -> (i32, i32) {
    %c0_i32 = arith.constant 0 : i32
    %c0_i32_0 = arith.constant 0 : i32
    %c0_i32_1 = arith.constant 0 : i32
    return %c0_i32, %c0_i32_0 : i32, i32
  }
  func.func @transform_5(%arg0: i32) -> (i32, i32) {
    %c0_i32 = arith.constant 0 : i32
    %c0_i32_0 = arith.constant 0 : i32
    %c0_i32_1 = arith.constant 0 : i32
    return %c0_i32, %c0_i32_0 : i32, i32
  }
  func.func @transform_6(%arg0: i32) -> (i32, i32) {
    %c0_i32 = arith.constant 0 : i32
    %c0_i32_0 = arith.constant 0 : i32
    %c0_i32_1 = arith.constant 0 : i32
    return %c0_i32, %c0_i32_0 : i32, i32
  }
  func.func @transform_7(%arg0: i32) -> (i32, i32) {
    %c0_i32 = arith.constant 0 : i32
    %c0_i32_0 = arith.constant 0 : i32
    %c0_i32_1 = arith.constant 0 : i32
    return %c0_i32, %c0_i32_0 : i32, i32
  }
  func.func @transform_8(%arg0: i32) -> (i32, i32) {
    %c0_i32 = arith.constant 0 : i32
    %c0_i32_0 = arith.constant 0 : i32
    %c0_i32_1 = arith.constant 0 : i32
    return %c0_i32, %c0_i32_0 : i32, i32
  }
  func.func @transform_9(%arg0: i32) -> (i32, i32) {
    %c0_i32 = arith.constant 0 : i32
    %c0_i32_0 = arith.constant 0 : i32
    return %arg0, %c0_i32 : i32, i32
  }
}

</mosaic_0001>

<bundles_post_ra>
// kernel: base_cnn_forward.1
= control target key start
LH: loop header
LB: loop body
LE: loop exit
PB: predicated region body
PF: predicated region fallthrough
CT: control target
= control target key end

     0   :  { %vm163_vm0 = vcmask 130048   ;;  %vm3895_vm1 = vmmov 0   ;;  %vm2881_vm2 = vcmask 7168   ;;  %s4919_s1 = inlined_call_operand.vmem [shape: bf16[16,128], index: 1, kind: input, shape index: {}]   ;;  %s4920_s0 = inlined_call_operand.vmem [shape: bf16[3,256,16], index: 0, kind: input, shape index: {}]   ;;  %s4921_s3 = inlined_call_operand.vmem [shape: bf16[512,128], index: 3, kind: input, shape index: {}]   ;;  %s4922_s2 = inlined_call_operand.vmem [shape: f32[1,128], index: 2, kind: input, shape index: {}]   ;;  %s4923_s5 = inlined_call_operand.vmem [shape: bf16[1152,128], index: 5, kind: input, shape index: {}]   ;;  %s4924_s4 = inlined_call_operand.vmem [shape: f32[1,128], index: 4, kind: input, shape index: {}]   ;;  %s4925_s7 = inlined_call_operand.vmem [shape: bf16[128,1], index: 7, kind: input, shape index: {}]   ;;  %s4926_s8 = inlined_call_operand.<no memory space> [shape: f32[1,1], index: 8, kind: input, shape index: {}]   ;;  %s4927_s6 = inlined_call_operand.vmem [shape: f32[1,128], index: 6, kind: input, shape index: {}]   ;;  %s4928_s9 = inlined_call_operand.vmem [shape: f32[8,1], index: 9, kind: output, shape index: {}]  }
   0x1   :  { %v3722_v0 = vld [vmem:[%s4919_s1] sm:$0xff]   ;;  %v3725_v3 = vld [vmem:[%s4920_s0 + $0x8] sm:$0xff]   ;;  %v3727_v5 = vld [vmem:[%s4920_s0 + $0x10] sm:$0xff]  }
   0x2   :  { %v3723_v1 = vld [vmem:[%s4920_s0] sm:$0xff]   ;;  %3577 = vmatprep.subr.bf16.mxu0 %v3722_v0  ;;  %3611 = vmatprep.subr.bf16.mxu1 %v3722_v0  ;;  %v3726_v4 = vld [vmem:[%s4920_s0 + $0x88] sm:$0xff]   ;;  %v3728_v6 = vld [vmem:[%s4920_s0 + $0x90] sm:$0xff]  }
   0x3   :  { %v3724_v2 = vld [vmem:[%s4920_s0 + $0x80] sm:$0xff]   ;;  %3578 = vmatpush3.bf16.msra.mxu0 %v3722_v0  ;;  %3612 = vmatpush3.bf16.msra.mxu1 %v3722_v0  ;;  %v3729_v7 = vld [vmem:[%s4920_s0 + $0x18] sm:$0xff]   ;;  %v3733_v11 = vld [vmem:[%s4920_s0 + $0x28] sm:$0xff]  }
   0x4   :  { %3579 = vmatprep.mubr.msk.bf16.mxu0 %vm163_vm0, %v3723_v1  ;;  %3613 = vmatprep.mubr.msk.bf16.mxu1 %vm163_vm0, %v3724_v2  ;;  %v3730_v8 = vld [vmem:[%s4920_s0 + $0x98] sm:$0xff]   ;;  %v3731_v9 = vld [vmem:[%s4920_s0 + $0x20] sm:$0xff]   ;;  %v3734_v12 = vld [vmem:[%s4920_s0 + $0xa8] sm:$0xff]  }
   0x5   :  { %3645 = vmatprep.subr.bf16.mxu0 %v3722_v0  ;;  %v3732_v10 = vld [vmem:[%s4920_s0 + $0xa0] sm:$0xff]   ;;  %v3735_v13 = vld [vmem:[%s4920_s0 + $0x30] sm:$0xff]   ;;  %v3737_v15 = vld [vmem:[%s4920_s0 + $0x38] sm:$0xff]  }
   0x6   :  { %3580 = vmatmul.mubr.msk.bf16.vlgmr.msra.gmra.mrb[0].mxu0 %vm163_vm0, %v3725_v3  ;;  %3614 = vmatmul.mubr.msk.bf16.vlgmr.msra.gmra.mrb[0].mxu1 %vm163_vm0, %v3726_v4  ;;  %v3736_v14 = vld [vmem:[%s4920_s0 + $0xb0] sm:$0xff]   ;;  %v3738_v16 = vld [vmem:[%s4920_s0 + $0xb8] sm:$0xff]   ;;  %v3739_v17 = vld [vmem:[%s4920_s0 + $0x40] sm:$0xff]  }
   0x7   :  { %3646 = vmatpush3.bf16.msra.mxu0 %v3722_v0  ;;  %3583 = vmatprep.mubr.msk.bf16.mxu0 %vm163_vm0, %v3727_v5  ;;  %v3740_v18 = vld [vmem:[%s4920_s0 + $0xc0] sm:$0xff]   ;;  %v3741_v19 = vld [vmem:[%s4920_s0 + $0x48] sm:$0xff]   ;;  %v3743_v21 = vld [vmem:[%s4920_s0 + $0x50] sm:$0xff]  }
   0x8   :  { %3617 = vmatprep.mubr.msk.bf16.mxu1 %vm163_vm0, %v3728_v6  ;;  %v3742_v20 = vld [vmem:[%s4920_s0 + $0xc8] sm:$0xff]   ;;  %v3744_v22 = vld [vmem:[%s4920_s0 + $0xd0] sm:$0xff]   ;;  %v3745_v23 = vld [vmem:[%s4920_s0 + $0x58] sm:$0xff]  }
   0x9   :  { %v3746_v24 = vld [vmem:[%s4920_s0 + $0xd8] sm:$0xff]   ;;  %v3747_v25 = vld [vmem:[%s4920_s0 + $0x60] sm:$0xff]   ;;  %v3749_v27 = vld [vmem:[%s4920_s0 + $0x68] sm:$0xff]  }
   0xa   :  { %v3748_v26 = vld [vmem:[%s4920_s0 + $0xe0] sm:$0xff]   ;;  %v3750_v28 = vld [vmem:[%s4920_s0 + $0xe8] sm:$0xff]   ;;  %v3751_v29 = vld [vmem:[%s4920_s0 + $0x70] sm:$0xff]  }
   0xb   :  { %v3752_v30 = vld [vmem:[%s4920_s0 + $0xf0] sm:$0xff]   ;;  %v3753_v31 = vld [vmem:[%s4920_s0 + $0x78] sm:$0xff]   ;;  %v3755_v33 = vld [vmem:[%s4920_s0 + $0x100] sm:$0xff]  }
   0xc   :  { %v3754_v32 = vld [vmem:[%s4920_s0 + $0xf8] sm:$0xff]   ;;  %v3756_v34 = vld [vmem:[%s4920_s0 + $0x108] sm:$0xff]   ;;  %v3757_v35 = vld [vmem:[%s4920_s0 + $0x110] sm:$0xff]  }
   0xd   :  { %v3758_v36 = vld [vmem:[%s4920_s0 + $0x118] sm:$0xff]   ;;  %v3759_v37 = vld [vmem:[%s4920_s0 + $0x120] sm:$0xff]   ;;  %v3760_v38 = vld [vmem:[%s4920_s0 + $0x128] sm:$0xff]  }
   0xe   :  { %3584 = vmatmul.mubr.msk.bf16.gmra.mrb[4].mxu0 %vm163_vm0, %v3729_v7  ;;  %3618 = vmatmul.mubr.msk.bf16.gmra.mrb[4].mxu1 %vm163_vm0, %v3730_v8  ;;  %v3761_v39 = vld [vmem:[%s4920_s0 + $0x130] sm:$0xff]   ;;  %v3762_v40 = vld [vmem:[%s4920_s0 + $0x138] sm:$0xff]   ;;  %v3763_v41 = vld [vmem:[%s4920_s0 + $0x140] sm:$0xff]  }
   0xf   :  { %3587 = vmatprep.mubr.msk.bf16.mxu0 %vm163_vm0, %v3731_v9  ;;  %3621 = vmatprep.mubr.msk.bf16.mxu1 %vm163_vm0, %v3732_v10  ;;  %v3764_v42 = vld [vmem:[%s4920_s0 + $0x148] sm:$0xff]   ;;  %v3765_v43 = vld [vmem:[%s4920_s0 + $0x150] sm:$0xff]   ;;  %v3766_v44 = vld [vmem:[%s4920_s0 + $0x158] sm:$0xff]  }
  0x10   :  { %v3767_v45 = vld [vmem:[%s4920_s0 + $0x160] sm:$0xff]   ;;  %v3768_v46 = vld [vmem:[%s4920_s0 + $0x168] sm:$0xff]   ;;  %v3769_v47 = vld [vmem:[%s4920_s0 + $0x170] sm:$0xff]  }
  0x11   :  { %v3771_v48 = vld [vmem:[%s4921_s3 + $0x40] sm:$0xff]   ;;  %v3770_v52 = vld [vmem:[%s4920_s0 + $0x178] sm:$0xff]   ;;  %v3775_v53 = vld [vmem:[%s4921_s3 + $0x48] sm:$0xff]  }
  0x12   :  { %v3772_v49 = vld [vmem:[%s4921_s3] sm:$0xff]   ;;  %3247 = vmatprep.subr.bf16.mxu1 %v3771_v48  ;;  %v3776_v54 = vld [vmem:[%s4921_s3 + $0x8] sm:$0xff]   ;;  %v3779_v57 = vld [vmem:[%s4921_s3 + $0x50] sm:$0xff]  }
  0x13   :  { %v3773_v50 = vld [vmem:[%s4921_s3 + $0xc0] sm:$0xff]   ;;  %3248 = vmatpush3.bf16.msra.mxu1 %v3772_v49  ;;  %v3777_v55 = vld [vmem:[%s4921_s3 + $0xc8] sm:$0xff]   ;;  %v3780_v58 = vld [vmem:[%s4921_s3 + $0x10] sm:$0xff]  }
  0x14   :  { %v3774_v51 = vld [vmem:[%s4921_s3 + $0x80] sm:$0xff]   ;;  %3359 = vmatprep.subr.bf16.mxu0 %v3773_v50  ;;  %3249 = vmatprep.subr.bf16.mxu1 %v3775_v53  ;;  %v3778_v56 = vld [vmem:[%s4921_s3 + $0x88] sm:$0xff]   ;;  %v3781_v59 = vld [vmem:[%s4921_s3 + $0xd0] sm:$0xff]  }
  0x15   :  { %v3782_v60 = vld [vmem:[%s4921_s3 + $0x90] sm:$0xff]   ;;  %v3783_v61 = vld [vmem:[%s4921_s3 + $0x58] sm:$0xff]   ;;  %v3787_v1 = vld [vmem:[%s4921_s3 + $0x60] sm:$0xff]  }
  0x16   :  { %3588 = vmatmul.mubr.msk.bf16.gmra.mrb[8].mxu0 %vm163_vm0, %v3733_v11  ;;  %3622 = vmatmul.mubr.msk.bf16.gmra.mrb[8].mxu1 %vm163_vm0, %v3734_v12  ;;  %v3784_v62 = vld [vmem:[%s4921_s3 + $0x18] sm:$0xff]   ;;  %v3788_v2 = vld [vmem:[%s4921_s3 + $0x20] sm:$0xff]   ;;  %v3791_v5 = vld [vmem:[%s4921_s3 + $0x68] sm:$0xff]  }
  0x17   :  { %3591 = vmatprep.mubr.msk.bf16.mxu0 %vm163_vm0, %v3735_v13  ;;  %3625 = vmatprep.mubr.msk.bf16.mxu1 %vm163_vm0, %v3736_v14  ;;  %v3785_v63 = vld [vmem:[%s4921_s3 + $0xd8] sm:$0xff]   ;;  %v3789_v3 = vld [vmem:[%s4921_s3 + $0xe0] sm:$0xff]   ;;  %v3792_v6 = vld [vmem:[%s4921_s3 + $0x28] sm:$0xff]  }
  0x18   :  { %3250 = vmatpush3.bf16.msra.mxu1 %v3776_v54  ;;  %v3786_v0 = vld [vmem:[%s4921_s3 + $0x98] sm:$0xff]   ;;  %v3790_v4 = vld [vmem:[%s4921_s3 + $0xa0] sm:$0xff]   ;;  %v3795_v7 = vld [vmem:[%s4921_s3 + $0x70] sm:$0xff]  }
  0x19   :  { %3251 = vmatprep.subr.bf16.mxu1 %v3779_v57  ;;  %v3796_v8 = vld [vmem:[%s4921_s3 + $0x30] sm:$0xff]   ;;  %v3793_v9 = vld [vmem:[%s4921_s3 + $0xe8] sm:$0xff]   ;;  %v3799_v11 = vld [vmem:[%s4921_s3 + $0x78] sm:$0xff]  }
  0x1a   :  { %v3794_v10 = vld [vmem:[%s4921_s3 + $0xa8] sm:$0xff]   ;;  %v3800_v12 = vld [vmem:[%s4921_s3 + $0x38] sm:$0xff]   ;;  %v3797_v13 = vld [vmem:[%s4921_s3 + $0xf0] sm:$0xff]  }
  0x1b   :  { %v3798_v14 = vld [vmem:[%s4921_s3 + $0xb0] sm:$0xff]  }
  0x1c   :  { %3252 = vmatpush3.bf16.msra.mxu1 %v3780_v58 }
  0x1d   :  { %3253 = vmatprep.subr.bf16.mxu1 %v3783_v61 }
  0x1e   :  { %3592 = vmatmul.mubr.msk.bf16.gmra.mrb[12].mxu0 %vm163_vm0, %v3737_v15  ;;  %3626 = vmatmul.mubr.msk.bf16.gmra.mrb[12].mxu1 %vm163_vm0, %v3738_v16  ;;  %v3801_v15 = vld [vmem:[%s4921_s3 + $0xf8] sm:$0xff]  }
  0x1f   :  { %3595 = vmatprep.mubr.msk.bf16.mxu0 %vm163_vm0, %v3739_v17  ;;  %3629 = vmatprep.mubr.msk.bf16.mxu1 %vm163_vm0, %v3740_v18  ;;  %v3802_v16 = vld [vmem:[%s4921_s3 + $0xb8] sm:$0xff]  }
  0x20   :  { %3254 = vmatpush3.bf16.msra.mxu1 %v3784_v62 }
  0x21   :  { %3255 = vmatprep.subr.bf16.mxu1 %v3787_v1 }
  0x24   :  { %3256 = vmatpush3.bf16.msra.mxu1 %v3788_v2 }
  0x25   :  { %3257 = vmatprep.subr.bf16.mxu1 %v3791_v5 }
  0x26   :  { %3596 = vmatmul.mubr.msk.bf16.gmra.mrb[16].mxu0 %vm163_vm0, %v3741_v19  ;;  %3630 = vmatmul.mubr.msk.bf16.gmra.mrb[16].mxu1 %vm163_vm0, %v3742_v20 }
  0x27   :  { %3599 = vmatprep.mubr.msk.bf16.mxu0 %vm163_vm0, %v3743_v21  ;;  %3633 = vmatprep.mubr.msk.bf16.mxu1 %vm163_vm0, %v3744_v22 }
  0x28   :  { %3258 = vmatpush3.bf16.msra.mxu1 %v3792_v6 }
  0x29   :  { %3259 = vmatprep.subr.bf16.mxu1 %v3795_v7 }
  0x2c   :  { %3260 = vmatpush3.bf16.msra.mxu1 %v3796_v8 }
  0x2d   :  { %3261 = vmatprep.subr.bf16.mxu1 %v3799_v11 }
  0x2e   :  { %3600 = vmatmul.mubr.msk.bf16.gmra.mrb[20].mxu0 %vm163_vm0, %v3745_v23  ;;  %3634 = vmatmul.mubr.msk.bf16.gmra.mrb[20].mxu1 %vm163_vm0, %v3746_v24 }
  0x2f   :  { %3603 = vmatprep.mubr.msk.bf16.mxu0 %vm163_vm0, %v3747_v25  ;;  %3637 = vmatprep.mubr.msk.bf16.mxu1 %vm163_vm0, %v3748_v26 }
  0x30   :  { %3262 = vmatpush3.bf16.msra.mxu1 %v3800_v12 }
  0x36   :  { %3604 = vmatmul.mubr.msk.bf16.gmra.mrb[24].mxu0 %vm163_vm0, %v3749_v27  ;;  %3638 = vmatmul.mubr.msk.bf16.gmra.mrb[24].mxu1 %vm163_vm0, %v3750_v28  ;;  %v3893_v28 = vmov 0  }
  0x37   :  { %3607 = vmatprep.mubr.msk.bf16.mxu0 %vm163_vm0, %v3751_v29  ;;  %3641 = vmatprep.mubr.msk.bf16.mxu1 %vm163_vm0, %v3752_v30  ;;  %41 = vst [vmem:[#allocation2 + $0x1d8] sm:$0xf0] %v3893_v28  ;;  %39 = vst [vmem:[#allocation2 + $0x1e8] sm:$0xf0] %v3893_v28 }
  0x38   :  { %40 = vst [vmem:[#allocation2 + $0x1f0] sm:$0xff] %v3893_v28 }
  0x3e   :  { %3608 = vmatmul.mubr.msk.bf16.gmra.mrb[28].mxu0 %vm163_vm0, %v3753_v31  ;;  %3642 = vmatmul.mubr.msk.bf16.gmra.mrb[28].mxu1 %vm163_vm0, %v3754_v32 }
  0x3f   :  { %3647 = vmatprep.mubr.msk.bf16.mxu0 %vm163_vm0, %v3755_v33 }
  0x46   :  { %3648 = vmatmul.mubr.msk.bf16.vlgmr.msra.gmra.mrb[32].mxu0 %vm163_vm0, %v3756_v34 }
  0x47   :  { %3651 = vmatprep.mubr.msk.bf16.mxu0 %vm163_vm0, %v3757_v35  ;;  %3360 = vmatpush3.bf16.msra.mxu0 %v3774_v51 }
  0x48   :  { %3361 = vmatprep.subr.bf16.mxu0 %v3777_v55 }
  0x4b   :  { %3362 = vmatpush3.bf16.msra.mxu0 %v3778_v56 }
  0x4c   :  { %3363 = vmatprep.subr.bf16.mxu0 %v3781_v59 }
  0x4e   :  { %3652 = vmatmul.mubr.msk.bf16.gmra.mrb[36].mxu0 %vm163_vm0, %v3758_v36 }
  0x4f   :  { %3655 = vmatprep.mubr.msk.bf16.mxu0 %vm163_vm0, %v3759_v37  ;;  %3364 = vmatpush3.bf16.msra.mxu0 %v3782_v60 }
  0x50   :  { %3365 = vmatprep.subr.bf16.mxu0 %v3785_v63 }
  0x53   :  { %3366 = vmatpush3.bf16.msra.mxu0 %v3786_v0 }
  0x54   :  { %3367 = vmatprep.subr.bf16.mxu0 %v3789_v3 }
  0x56   :  { %3656 = vmatmul.mubr.msk.bf16.gmra.mrb[40].mxu0 %vm163_vm0, %v3760_v38 }
  0x57   :  { %3659 = vmatprep.mubr.msk.bf16.mxu0 %vm163_vm0, %v3761_v39  ;;  %3368 = vmatpush3.bf16.msra.mxu0 %v3790_v4 }
  0x58   :  { %3369 = vmatprep.subr.bf16.mxu0 %v3793_v9 }
  0x5b   :  { %3370 = vmatpush3.bf16.msra.mxu0 %v3794_v10 }
  0x5c   :  { %3371 = vmatprep.subr.bf16.mxu0 %v3797_v13 }
  0x5e   :  { %3660 = vmatmul.mubr.msk.bf16.gmra.mrb[44].mxu0 %vm163_vm0, %v3762_v40 }
  0x5f   :  { %3663 = vmatprep.mubr.msk.bf16.mxu0 %vm163_vm0, %v3763_v41  ;;  %3372 = vmatpush3.bf16.msra.mxu0 %v3798_v14 }
  0x60   :  { %3373 = vmatprep.subr.bf16.mxu0 %v3801_v15 }
  0x63   :  { %3374 = vmatpush3.bf16.msra.mxu0 %v3802_v16 }
  0x66   :  { %3664 = vmatmul.mubr.msk.bf16.gmra.mrb[48].mxu0 %vm163_vm0, %v3764_v42 }
  0x67   :  { %3667 = vmatprep.mubr.msk.bf16.mxu0 %vm163_vm0, %v3765_v43 }
  0x6e   :  { %3668 = vmatmul.mubr.msk.bf16.gmra.mrb[52].mxu0 %vm163_vm0, %v3766_v44 }
  0x6f   :  { %3671 = vmatprep.mubr.msk.bf16.mxu0 %vm163_vm0, %v3767_v45 }
  0x76   :  { %3672 = vmatmul.mubr.msk.bf16.gmra.mrb[56].mxu0 %vm163_vm0, %v3768_v46 }
  0x77   :  { %3675 = vmatprep.mubr.msk.bf16.mxu0 %vm163_vm0, %v3769_v47 }
  0x7e   :  { %3676 = vmatmul.mubr.msk.bf16.gmra.mrb[60].mxu0 %vm163_vm0, %v3770_v52 }
  0xd9   :  { %v4237_v17 = vpop.f32.mrb[0].mxu0  ;;  %v4239_v18 = vpop.f32.mrb[0].mxu1 }
  0xda   :  { %v4243_v20 = vpop.f32.mrb[1].mxu0  ;;  %v4245_v21 = vpop.f32.mrb[1].mxu1  ;;  %v4957_v16 = vmax.f32 %v4237_v17, %v4239_v18 }
  0xdb   :  { %v4249_v23 = vpop.f32.mrb[2].mxu0  ;;  %v4251_v24 = vpop.f32.mrb[2].mxu1  ;;  %v4958_v10 = vmax.f32 %v4243_v20, %v4245_v21  ;;  %v3803_v21 = vld [vmem:[%s4923_s5 + $0x40] sm:$0xff]  }
  0xdc   :  { %v4255_v26 = vpop.f32.mrb[3].mxu0  ;;  %v4257_v27 = vpop.f32.mrb[3].mxu1  ;;  %v4959_v13 = vmax.f32 %v4249_v23, %v4251_v24  ;;  %3471 = vmatprep.subr.bf16.mxu1 %v3803_v21  ;;  %v3806_v21 = vld [vmem:[%s4923_s5 + $0x8] sm:$0xff]  }
  0xe1   :  { %v4261_v30 = vpop.f32.mrb[4].mxu0  ;;  %v4263_v31 = vpop.f32.mrb[4].mxu1 }
  0xe2   :  { %v4267_v33 = vpop.f32.mrb[5].mxu0  ;;  %v4269_v34 = vpop.f32.mrb[5].mxu1 }
  0xe3   :  { %v4273_v36 = vpop.f32.mrb[6].mxu0  ;;  %v4275_v37 = vpop.f32.mrb[6].mxu1 }
  0xe4   :  { %v4279_v39 = vpop.f32.mrb[7].mxu0  ;;  %v4281_v40 = vpop.f32.mrb[7].mxu1 }
  0xe9   :  { %v4285_v42 = vpop.f32.mrb[8].mxu0  ;;  %v4287_v43 = vpop.f32.mrb[8].mxu1 }
  0xea   :  { %v4291_v45 = vpop.f32.mrb[9].mxu0  ;;  %v4293_v46 = vpop.f32.mrb[9].mxu1 }
  0xeb   :  { %v4297_v48 = vpop.f32.mrb[10].mxu0  ;;  %v4299_v49 = vpop.f32.mrb[10].mxu1 }
  0xec   :  { %v4303_v51 = vpop.f32.mrb[11].mxu0  ;;  %v4305_v52 = vpop.f32.mrb[11].mxu1 }
  0xf1   :  { %v4309_v54 = vpop.f32.mrb[12].mxu0  ;;  %v4311_v55 = vpop.f32.mrb[12].mxu1 }
  0xf2   :  { %v4315_v57 = vpop.f32.mrb[13].mxu0  ;;  %v4317_v58 = vpop.f32.mrb[13].mxu1 }
  0xf3   :  { %v4321_v60 = vpop.f32.mrb[14].mxu0  ;;  %v4323_v61 = vpop.f32.mrb[14].mxu1 }
  0xf4   :  { %v4327_v63 = vpop.f32.mrb[15].mxu0  ;;  %v4329_v0 = vpop.f32.mrb[15].mxu1 }
  0xf9   :  { %v4333_v2 = vpop.f32.mrb[16].mxu0  ;;  %v4335_v3 = vpop.f32.mrb[16].mxu1 }
  0xfa   :  { %v4339_v5 = vpop.f32.mrb[17].mxu0  ;;  %v4341_v6 = vpop.f32.mrb[17].mxu1 }
  0xfb   :  { %v4345_v8 = vpop.f32.mrb[18].mxu0  ;;  %v4347_v9 = vpop.f32.mrb[18].mxu1 }
  0xfc   :  { %v4351_v11 = vpop.f32.mrb[19].mxu0  ;;  %v4353_v12 = vpop.f32.mrb[19].mxu1 }
 0x101   :  { %v4357_v14 = vpop.f32.mrb[20].mxu0  ;;  %v4359_v15 = vpop.f32.mrb[20].mxu1 }
 0x102   :  { %v4363_v28 = vpop.f32.mrb[21].mxu0  ;;  %v4365_v7 = vpop.f32.mrb[21].mxu1 }
 0x103   :  { %v4369_v4 = vpop.f32.mrb[22].mxu0  ;;  %v4371_v1 = vpop.f32.mrb[22].mxu1 }
 0x104   :  { %v4375_v62 = vpop.f32.mrb[23].mxu0  ;;  %v4377_v59 = vpop.f32.mrb[23].mxu1 }
 0x109   :  { %v4381_v56 = vpop.f32.mrb[24].mxu0  ;;  %v4383_v53 = vpop.f32.mrb[24].mxu1 }
 0x10a   :  { %v4387_v50 = vpop.f32.mrb[25].mxu0  ;;  %v4389_v47 = vpop.f32.mrb[25].mxu1 }
 0x10b   :  { %4943 = vst [vmem:[#allocation5_spill] sm:$0xff] %v4387_v50  ;;  %4944 = vst [vmem:[#allocation6_spill] sm:$0xff] %v4389_v47  ;;  %v4393_v44 = vpop.f32.mrb[26].mxu0  ;;  %v4395_v41 = vpop.f32.mrb[26].mxu1  ;;  %v4960_v50 = vmax.f32 %v4255_v26, %v4257_v27 }
 0x10c   :  { %4945 = vst [vmem:[#allocation7_spill] sm:$0xff] %v4393_v44  ;;  %4946 = vst [vmem:[#allocation8_spill] sm:$0xff] %v4395_v41  ;;  %v4399_v38 = vpop.f32.mrb[27].mxu0  ;;  %v4401_v35 = vpop.f32.mrb[27].mxu1 }
 0x10d   :  { %4947 = vst [vmem:[#allocation9_spill] sm:$0xff] %v4399_v38  ;;  %4948 = vst [vmem:[#allocation10_spill] sm:$0xff] %v4401_v35 }
 0x111   :  { %v4405_v32 = vpop.f32.mrb[28].mxu0  ;;  %v4407_v29 = vpop.f32.mrb[28].mxu1 }
 0x112   :  { %4949 = vst [vmem:[#allocation11_spill] sm:$0xff] %v4405_v32  ;;  %4950 = vst [vmem:[#allocation12_spill] sm:$0xff] %v4407_v29  ;;  %v4411_v25 = vpop.f32.mrb[29].mxu0  ;;  %v4413_v22 = vpop.f32.mrb[29].mxu1  ;;  %v4432_v32 = vld [vmem:[%s4922_s2] ss:$0 sm:$0xff] }
 0x113   :  { %4951 = vst [vmem:[#allocation13_spill] sm:$0xff] %v4411_v25  ;;  %4952 = vst [vmem:[#allocation14_spill] sm:$0xff] %v4413_v22  ;;  %v4417_v19 = vpop.f32.mrb[30].mxu0  ;;  %v4419_v41 = vpop.f32.mrb[30].mxu1 }
 0x114   :  { %4953 = vst [vmem:[#allocation15_spill] sm:$0xff] %v4417_v19  ;;  %4954 = vst [vmem:[#allocation16_spill] sm:$0xff] %v4419_v41  ;;  %v4423_v35 = vpop.f32.mrb[31].mxu0  ;;  %v4425_v38 = vpop.f32.mrb[31].mxu1 }
 0x115   :  { %4955 = vst [vmem:[#allocation17_spill] sm:$0xff] %v4423_v35  ;;  %4956 = vst [vmem:[#allocation18_spill] sm:$0xff] %v4425_v38 }
 0x119   :  { %v3649_v29 = vpop.f32.mrb[32].mxu0 }
 0x11a   :  { %v1051_v22 = vmax.f32 %v4957_v16, %v3649_v29  ;;  %v922_v25 = vpop.f32.mrb[33].mxu0  ;;  %v4963_v16 = vmax.f32 %v4273_v36, %v4275_v37  ;;  %v3809_v36 = vld [vmem:[%s4923_s5 + $0x140] sm:$0xff]  }
 0x11b   :  { %v1049_v41 = vmax.f32 %v4958_v10, %v922_v25  ;;  %v3650_v19 = vpop.f32.mrb[34].mxu0  ;;  %3515 = vmatprep.subr.bf16.mxu0 %v3809_v36  ;;  %v3812_v36 = vld [vmem:[%s4923_s5 + $0x18] sm:$0xff]  }
 0x11c   :  { %v1090_v44 = vadd.f32 %v4432_v32, %v1051_v22  ;;  %v1052_v38 = vmax.f32 %v4959_v13, %v3650_v19  ;;  %v925_v35 = vpop.f32.mrb[35].mxu0 }
 0x11d   :  { %v1088_v47 = vadd.f32 %v4432_v32, %v1049_v41  ;;  %v1050_v17 = vmax.f32 %v4960_v50, %v925_v35  ;;  %v4961_v41 = vmax.f32 %v4261_v30, %v4263_v31  ;;  %v3805_v31 = vld [vmem:[%s4923_s5 + $0x48] sm:$0xff]  }
 0x11e   :  { %v1091_v18 = vadd.f32 %v4432_v32, %v1052_v38  ;;  %v1122_v29 = vmax.f32 %v1090_v44, 0.0  ;;  %v4962_v44 = vmax.f32 %v4267_v33, %v4269_v34  ;;  %v4964_v33 = vmax.f32 %v4279_v39, %v4281_v40 }
 0x11f   :  { %v1089_v20 = vadd.f32 %v4432_v32, %v1050_v17  ;;  %v1120_v22 = vmax.f32 %v1088_v47, 0.0  ;;  %v3804_v47 = vld [vmem:[%s4923_s5] sm:$0xff]  }
 0x120   :  { %v1123_v25 = vmax.f32 %v1091_v18, 0.0 }
 0x121   :  { %v1121_v23 = vmax.f32 %v1089_v20, 0.0  ;;  %v3653_v19 = vpop.f32.mrb[36].mxu0 }
 0x122   :  { %v1153_v24 = vpack.c.bf16 %v1123_v25, %v1122_v29  ;;  %v1055_v26 = vmax.f32 %v4961_v41, %v3653_v19  ;;  %v938_v27 = vpop.f32.mrb[37].mxu0  ;;  %v3807_v41 = vld [vmem:[%s4923_s5 + $0x50] sm:$0xff]  }
 0x123   :  { %v1152_v35 = vpack.c.bf16 %v1121_v23, %v1120_v22  ;;  %v1184_v38 = vpack.c.bf16 %v1122_v29, %v1121_v23  ;;  %v1053_v50 = vmax.f32 %v4962_v44, %v938_v27  ;;  %v3654_v10 = vpop.f32.mrb[38].mxu0  ;;  %v4965_v27 = vmax.f32 %v4285_v42, %v4287_v43  ;;  %v3808_v44 = vld [vmem:[%s4923_s5 + $0x10] sm:$0xff]   ;;  %v3813_v42 = vld [vmem:[%s4923_s5 + $0x148] sm:$0xff]  }
 0x124   :  { %v1094_v13 = vadd.f32 %v4432_v32, %v1055_v26  ;;  %v1056_v17 = vmax.f32 %v4963_v16, %v3654_v10  ;;  %v941_v30 = vpop.f32.mrb[39].mxu0 }
 0x125   :  { %v1092_v18 = vadd.f32 %v4432_v32, %v1053_v50  ;;  %v1054_v34 = vmax.f32 %v4964_v33, %v941_v30  ;;  %1605 = vmatprep.mubr.bf16.mxu1 %v1184_v38 }
 0x126   :  { %v1095_v29 = vadd.f32 %v4432_v32, %v1056_v17  ;;  %1606 = vmatmul.mubr.bf16.vlgmr.msra.gmra.mrb[32].mxu1 %v1152_v35  ;;  %v1126_v22 = vmax.f32 %v1094_v13, 0.0  ;;  %v4967_v17 = vmax.f32 %v4297_v48, %v4299_v49  ;;  %v3814_v48 = vld [vmem:[%s4923_s5 + $0x108] sm:$0xff]  }
 0x127   :  { %v1124_v37 = vmax.f32 %v1092_v18, 0.0  ;;  %v1093_v20 = vadd.f32 %v4432_v32, %v1054_v34  ;;  %3472 = vmatpush3.bf16.msra.mxu1 %v3804_v47  ;;  %v4966_v47 = vmax.f32 %v4291_v45, %v4293_v46  ;;  %v3811_v45 = vld [vmem:[%s4923_s5 + $0x58] sm:$0xff]   ;;  %v4968_v18 = vmax.f32 %v4303_v51, %v4305_v52 }
 0x128   :  { %v1127_v23 = vmax.f32 %v1095_v29, 0.0  ;;  %3473 = vmatprep.subr.bf16.mxu1 %v3805_v31 }
 0x129   :  { %v1185_v39 = vpack.c.bf16 %v1124_v37, %v1123_v25  ;;  %v1125_v40 = vmax.f32 %v1093_v20, 0.0  ;;  %v3657_v19 = vpop.f32.mrb[40].mxu0  ;;  %v3810_v25 = vld [vmem:[%s4923_s5 + $0x100] sm:$0xff]  }
 0x12a   :  { %v4484_v26 = vpack.c.bf16 %v1127_v23, %v1126_v22  ;;  %v1059_v35 = vmax.f32 %v4965_v27, %v3657_v19  ;;  %v954_v38 = vpop.f32.mrb[41].mxu0  ;;  %v4970_v27 = vmax.f32 %v4315_v57, %v4317_v58 }
 0x12b   :  { %v1154_v50 = vpack.c.bf16 %v1125_v40, %v1124_v37  ;;  %v1186_v10 = vpack.c.bf16 %v1126_v22, %v1125_v40  ;;  %v1057_v13 = vmax.f32 %v4966_v47, %v954_v38  ;;  %v3658_v16 = vpop.f32.mrb[42].mxu0  ;;  %1613 = vmatprep.mubr.bf16.mxu1 %v1185_v39  ;;  %1761 = vmatprep.mubr.bf16.mxu0 %v1185_v39 }
 0x12c   :  { %v1098_v43 = vadd.f32 %v4432_v32, %v1059_v35  ;;  %v1060_v30 = vmax.f32 %v4967_v17, %v3658_v16  ;;  %v957_v31 = vpop.f32.mrb[43].mxu0  ;;  %1762 = vmatmul.mubr.bf16.vlgmr.msra.gmra.mrb[64].mxu0 %v1153_v24  ;;  %3474 = vmatpush3.bf16.msra.mxu1 %v3806_v21  ;;  %v4969_v22 = vmax.f32 %v4309_v54, %v4311_v55 }
 0x12d   :  { %v1096_v46 = vadd.f32 %v4432_v32, %v1057_v13  ;;  %v1058_v33 = vmax.f32 %v4968_v18, %v957_v31  ;;  %1769 = vmatprep.mubr.bf16.mxu0 %v1186_v10  ;;  %3475 = vmatprep.subr.bf16.mxu1 %v3807_v41  ;;  %v4972_v55 = vmax.f32 %v4327_v63, %v4329_v0 }
 0x12e   :  { %v1099_v34 = vadd.f32 %v4432_v32, %v1060_v30  ;;  %1614 = vmatmul.mubr.bf16.gmra.mrb[36].mxu1 %v1153_v24  ;;  %3516 = vmatpush3.bf16.msra.mxu0 %v3810_v25  ;;  %v1130_v51 = vmax.f32 %v1098_v43, 0.0  ;;  %v4973_v30 = vmax.f32 %v4333_v2, %v4335_v3  ;;  %v4976_v3 = vmax.f32 %v4351_v11, %v4353_v12 }
 0x12f   :  { %v1128_v49 = vmax.f32 %v1096_v46, 0.0  ;;  %v1097_v29 = vadd.f32 %v4432_v32, %v1058_v33  ;;  %1621 = vmatprep.mubr.bf16.mxu1 %v1186_v10  ;;  %3517 = vmatprep.subr.bf16.mxu0 %v3813_v42  ;;  %v4977_v11 = vmax.f32 %v4357_v14, %v4359_v15  ;;  %v4980_v15 = vmax.f32 %v4375_v62, %v4377_v59 }
 0x130   :  { %v1131_v52 = vmax.f32 %v1099_v34, 0.0  ;;  %3476 = vmatpush3.bf16.msra.mxu1 %v3808_v44  ;;  %v4971_v44 = vmax.f32 %v4321_v60, %v4323_v61  ;;  %v4975_v34 = vmax.f32 %v4345_v8, %v4347_v9 }
 0x131   :  { %v1187_v37 = vpack.c.bf16 %v1128_v49, %v1127_v23  ;;  %v1129_v20 = vmax.f32 %v1097_v29, 0.0  ;;  %v3661_v24 = vpop.f32.mrb[44].mxu0  ;;  %3477 = vmatprep.subr.bf16.mxu1 %v3811_v45 }
 0x132   :  { %v4520_v21 = vpack.c.bf16 %v1131_v52, %v1130_v51  ;;  %v1063_v39 = vmax.f32 %v4969_v22, %v3661_v24  ;;  %v970_v40 = vpop.f32.mrb[45].mxu0  ;;  %3518 = vmatpush3.bf16.msra.mxu0 %v3814_v48 }
 0x133   :  { %v1156_v19 = vpack.c.bf16 %v1129_v20, %v1128_v49  ;;  %v1188_v41 = vpack.c.bf16 %v1130_v51, %v1129_v20  ;;  %v1061_v35 = vmax.f32 %v4970_v27, %v970_v40  ;;  %v3662_v38 = vpop.f32.mrb[46].mxu0 }
 0x134   :  { %v1102_v23 = vadd.f32 %v4432_v32, %v1063_v39  ;;  %v1064_v25 = vmax.f32 %v4971_v44, %v3662_v38  ;;  %v973_v10 = vpop.f32.mrb[47].mxu0  ;;  %1770 = vmatmul.mubr.bf16.gmra.mrb[68].mxu0 %v1154_v50  ;;  %3478 = vmatpush3.bf16.msra.mxu1 %v3812_v36  ;;  %v4978_v39 = vmax.f32 %v4363_v28, %v4365_v7 }
 0x135   :  { %v1100_v54 = vadd.f32 %v4432_v32, %v1061_v35  ;;  %v1062_v47 = vmax.f32 %v4972_v55, %v973_v10  ;;  %1777 = vmatprep.mubr.bf16.mxu0 %v1187_v37  ;;  %v4979_v35 = vmax.f32 %v4369_v4, %v4371_v1 }
 0x136   :  { %v1103_v57 = vadd.f32 %v4432_v32, %v1064_v25  ;;  %1622 = vmatmul.mubr.bf16.gmra.mrb[40].mxu1 %v1154_v50  ;;  %v1134_v16 = vmax.f32 %v1102_v23, 0.0  ;;  %v4974_v50 = vmax.f32 %v4339_v5, %v4341_v6 }
 0x137   :  { %v1132_v58 = vmax.f32 %v1100_v54, 0.0  ;;  %v1101_v13 = vadd.f32 %v4432_v32, %v1062_v47  ;;  %1629 = vmatprep.mubr.bf16.mxu1 %v1187_v37 }
 0x138   :  { %v1135_v60 = vmax.f32 %v1103_v57, 0.0  ;;  %v4981_v57 = vmax.f32 %v4381_v56, %v4383_v53  ;;  %v4988_v56 = vld [vmem:[#allocation9_spill] sm:$0xff] }
 0x139   :  { %v1189_v61 = vpack.c.bf16 %v1132_v58, %v1131_v52  ;;  %v1133_v42 = vmax.f32 %v1101_v13, 0.0  ;;  %v3665_v43 = vpop.f32.mrb[48].mxu0 }
 0x13a   :  { %v4538_v17 = vpack.c.bf16 %v1135_v60, %v1134_v16  ;;  %v1067_v63 = vmax.f32 %v4973_v30, %v3665_v43  ;;  %v986_v0 = vpop.f32.mrb[49].mxu0  ;;  %v4985_v30 = vld [vmem:[#allocation7_spill] sm:$0xff] }
 0x13b   :  { %v4543_v31 = vpack.c.bf16 %v1133_v42, %v1132_v58  ;;  %v1190_v45 = vpack.c.bf16 %v1134_v16, %v1133_v42  ;;  %v1065_v46 = vmax.f32 %v4974_v50, %v986_v0  ;;  %v3666_v18 = vpop.f32.mrb[50].mxu0  ;;  %v4983_v16 = vld [vmem:[#allocation6_spill] sm:$0xff] }
 0x13c   :  { %v1106_v33 = vadd.f32 %v4432_v32, %v1067_v63  ;;  %v1068_v48 = vmax.f32 %v4975_v34, %v3666_v18  ;;  %v989_v49 = vpop.f32.mrb[51].mxu0  ;;  %1778 = vmatmul.mubr.bf16.gmra.mrb[72].mxu0 %v4484_v26  ;;  %v4986_v63 = vld [vmem:[#allocation8_spill] sm:$0xff]  ;;  %v4989_v18 = vld [vmem:[#allocation10_spill] sm:$0xff] }
 0x13d   :  { %v1104_v2 = vadd.f32 %v4432_v32, %v1065_v46  ;;  %v1066_v29 = vmax.f32 %v4976_v3, %v989_v49  ;;  %1785 = vmatprep.mubr.bf16.mxu0 %v1188_v41  ;;  %v4987_v0 = vmax.f32 %v4985_v30, %v4986_v63  ;;  %v3824_v30 = vld [vmem:[%s4923_s5 + $0x30] sm:$0xff]   ;;  %v3827_v63 = vld [vmem:[%s4923_s5 + $0x78] sm:$0xff]  }
 0x13e   :  { %v1107_v5 = vadd.f32 %v4432_v32, %v1068_v48  ;;  %1630 = vmatmul.mubr.bf16.gmra.mrb[44].mxu1 %v4484_v26  ;;  %v1138_v8 = vmax.f32 %v1106_v33, 0.0  ;;  %v4990_v33 = vmax.f32 %v4988_v56, %v4989_v18  ;;  %v3826_v56 = vld [vmem:[%s4923_s5 + $0x120] sm:$0xff]   ;;  %v3833_v18 = vld [vmem:[%s4923_s5 + $0x168] sm:$0xff]  }
 0x13f   :  { %v1136_v6 = vmax.f32 %v1104_v2, 0.0  ;;  %v1105_v36 = vadd.f32 %v4432_v32, %v1066_v29  ;;  %1637 = vmatprep.mubr.bf16.mxu1 %v1188_v41 }
 0x140   :  { %v1139_v9 = vmax.f32 %v1107_v5, 0.0 }
 0x141   :  { %v4560_v51 = vpack.c.bf16 %v1136_v6, %v1135_v60  ;;  %v1137_v52 = vmax.f32 %v1105_v36, 0.0  ;;  %v3669_v37 = vpop.f32.mrb[52].mxu0 }
 0x142   :  { %v4562_v20 = vpack.c.bf16 %v1139_v9, %v1138_v8  ;;  %v1071_v12 = vmax.f32 %v4977_v11, %v3669_v37  ;;  %v1002_v24 = vpop.f32.mrb[53].mxu0 }
 0x143   :  { %v4567_v22 = vpack.c.bf16 %v1137_v52, %v1136_v6  ;;  %v4569_v26 = vpack.c.bf16 %v1138_v8, %v1137_v52  ;;  %v1069_v40 = vmax.f32 %v4978_v39, %v1002_v24  ;;  %v3670_v41 = vpop.f32.mrb[54].mxu0  ;;  %v4992_v52 = vld [vmem:[#allocation12_spill] sm:$0xff] }
 0x144   :  { %v1110_v27 = vadd.f32 %v4432_v32, %v1071_v12  ;;  %v1072_v38 = vmax.f32 %v4979_v35, %v3670_v41  ;;  %v1005_v23 = vpop.f32.mrb[55].mxu0  ;;  %1786 = vmatmul.mubr.bf16.gmra.mrb[76].mxu0 %v1156_v19  ;;  %v4995_v41 = vld [vmem:[#allocation14_spill] sm:$0xff] }
 0x145   :  { %v1108_v14 = vadd.f32 %v4432_v32, %v1069_v40  ;;  %v1070_v44 = vmax.f32 %v4980_v15, %v1005_v23  ;;  %1793 = vmatprep.mubr.bf16.mxu0 %v1189_v61  ;;  %v4994_v40 = vld [vmem:[#allocation13_spill] sm:$0xff]  ;;  %v4998_v23 = vld [vmem:[#allocation16_spill] sm:$0xff] }
 0x146   :  { %v1111_v25 = vadd.f32 %v4432_v32, %v1072_v38  ;;  %1638 = vmatmul.mubr.bf16.gmra.mrb[48].mxu1 %v1156_v19  ;;  %v1142_v10 = vmax.f32 %v1110_v27, 0.0  ;;  %v4982_v19 = vld [vmem:[#allocation5_spill] sm:$0xff]  ;;  %v4997_v38 = vld [vmem:[#allocation15_spill] sm:$0xff] }
 0x147   :  { %v1140_v7 = vmax.f32 %v1108_v14, 0.0  ;;  %v1109_v28 = vadd.f32 %v4432_v32, %v1070_v44  ;;  %1645 = vmatprep.mubr.bf16.mxu1 %v1189_v61  ;;  %v4984_v60 = vmax.f32 %v4982_v19, %v4983_v16  ;;  %v4999_v14 = vmax.f32 %v4997_v38, %v4998_v23 }
 0x148   :  { %v1143_v54 = vmax.f32 %v1111_v25, 0.0 }
 0x149   :  { %v1193_v1 = vpack.c.bf16 %v1140_v7, %v1139_v9  ;;  %v1141_v4 = vmax.f32 %v1109_v28, 0.0  ;;  %v3673_v55 = vpop.f32.mrb[56].mxu0  ;;  %v4991_v9 = vld [vmem:[#allocation11_spill] sm:$0xff]  ;;  %v5001_v28 = vld [vmem:[#allocation18_spill] sm:$0xff] }
 0x14a   :  { %v4584_v47 = vpack.c.bf16 %v1143_v54, %v1142_v10  ;;  %v1075_v59 = vmax.f32 %v4981_v57, %v3673_v55  ;;  %v1018_v62 = vpop.f32.mrb[57].mxu0  ;;  %v4993_v37 = vmax.f32 %v4991_v9, %v4992_v52  ;;  %v4709_v52 = vld [vmem:[%s4924_s4] ss:$0 sm:$0xff] }
 0x14b   :  { %v4589_v58 = vpack.c.bf16 %v1141_v4, %v1140_v7  ;;  %v1194_v13 = vpack.c.bf16 %v1142_v10, %v1141_v4  ;;  %v1073_v42 = vmax.f32 %v4984_v60, %v1018_v62  ;;  %v3674_v61 = vpop.f32.mrb[58].mxu0  ;;  %v5000_v7 = vld [vmem:[#allocation17_spill] sm:$0xff] }
 0x14c   :  { %v1114_v43 = vadd.f32 %v4432_v32, %v1075_v59  ;;  %v1076_v50 = vmax.f32 %v4987_v0, %v3674_v61  ;;  %v1021_v46 = vpop.f32.mrb[59].mxu0  ;;  %1794 = vmatmul.mubr.bf16.gmra.mrb[80].mxu0 %v4520_v21  ;;  %v5002_v10 = vmax.f32 %v5000_v7, %v5001_v28  ;;  %v3828_v0 = vld [vmem:[%s4923_s5 + $0x38] sm:$0xff]  }
 0x14d   :  { %v1112_v53 = vadd.f32 %v4432_v32, %v1073_v42  ;;  %v1074_v34 = vmax.f32 %v4990_v33, %v1021_v46  ;;  %1801 = vmatprep.mubr.bf16.mxu0 %v1190_v45  ;;  %v3829_v46 = vld [vmem:[%s4923_s5 + $0xc0] sm:$0xff]   ;;  %v3835_v33 = vld [vmem:[%s4923_s5 + $0x128] sm:$0xff]  }
 0x14e   :  { %v1115_v48 = vadd.f32 %v4432_v32, %v1076_v50  ;;  %1646 = vmatmul.mubr.bf16.gmra.mrb[52].mxu1 %v4520_v21  ;;  %v1146_v3 = vmax.f32 %v1114_v43, 0.0  ;;  %v4996_v21 = vmax.f32 %v4994_v40, %v4995_v41  ;;  %v3884_v50 = vld [vmem:[#allocation2 + $0x1f0] sm:$0xff] }
 0x14f   :  { %v1144_v49 = vmax.f32 %v1112_v53, 0.0  ;;  %v1113_v2 = vadd.f32 %v4432_v32, %v1074_v34  ;;  %1653 = vmatprep.mubr.bf16.mxu1 %v1190_v45  ;;  %v3825_v53 = vld [vmem:[%s4923_s5 + $0x160] sm:$0xff]   ;;  %v3843_v34 = vld [vmem:[%s4923_s5 + $0x170] sm:$0xff]  }
 0x150   :  { %v1147_v29 = vmax.f32 %v1115_v48, 0.0  ;;  %v3845_v48 = vld [vmem:[%s4923_s5 + $0x130] sm:$0xff]  }
 0x151   :  { %v1195_v5 = vpack.c.bf16 %v1144_v49, %v1143_v54  ;;  %v1145_v6 = vmax.f32 %v1113_v2, 0.0  ;;  %v3677_v36 = vpop.f32.mrb[60].mxu0  ;;  %v3850_v2 = vld [vmem:[%s4923_s5 + $0x138] sm:$0xff]  }
 0x152   :  { %v1165_v8 = vpack.c.bf16 %v1147_v29, %v1146_v3  ;;  %v1079_v11 = vmax.f32 %v4993_v37, %v3677_v36  ;;  %v1034_v12 = vpop.f32.mrb[61].mxu0 }
 0x153   :  { %v1164_v24 = vpack.c.bf16 %v1145_v6, %v1144_v49  ;;  %v1196_v39 = vpack.c.bf16 %v1146_v3, %v1145_v6  ;;  %v1077_v27 = vmax.f32 %v4996_v21, %v1034_v12  ;;  %v3678_v35 = vpop.f32.mrb[62].mxu0  ;;  %v3849_v49 = vld [vmem:[%s4923_s5 + $0x178] sm:$0xff]   ;;  %v3894_v3 = vmov 0.0  }
 0x154   :  { %v1118_v45 = vadd.f32 %v4432_v32, %v1079_v11  ;;  %v1080_v15 = vmax.f32 %v4999_v14, %v3678_v35  ;;  %v1037_v44 = vpop.f32.mrb[63].mxu0  ;;  %1802 = vmatmul.mubr.bf16.gmra.mrb[84].mxu0 %v4543_v31 }
 0x155   :  { %v1116_v25 = vadd.f32 %v4432_v32, %v1077_v27  ;;  %v1078_v54 = vmax.f32 %v5002_v10, %v1037_v44  ;;  %1809 = vmatprep.mubr.bf16.mxu0 %v4560_v51 }
 0x156   :  { %v1119_v4 = vadd.f32 %v4432_v32, %v1080_v15  ;;  %1654 = vmatmul.mubr.bf16.gmra.mrb[56].mxu1 %v4543_v31  ;;  %v1150_v59 = vmax.f32 %v1118_v45, 0.0  ;;  %v3817_v31 = vld [vmem:[%s4923_s5 + $0x150] sm:$0xff]  }
 0x157   :  { %v1148_v55 = vmax.f32 %v1116_v25, 0.0  ;;  %v1117_v57 = vadd.f32 %v4432_v32, %v1078_v54  ;;  %1661 = vmatprep.mubr.bf16.mxu1 %v4560_v51  ;;  %v3815_v32 = vld [vmem:[%s4923_s5 + $0x60] sm:$0xff]   ;;  %v3818_v51 = vld [vmem:[%s4923_s5 + $0x110] sm:$0xff]   ;;  %3519 = vmatprep.subr.bf16.mxu0 %v3817_v31 }
 0x158   :  { %v1151_v62 = vmax.f32 %v1119_v4, 0.0  ;;  %3479 = vmatprep.subr.bf16.mxu1 %v3815_v32  ;;  %3520 = vmatpush3.bf16.msra.mxu0 %v3818_v51 }
 0x159   :  { %v1197_v19 = vpack.c.bf16 %v1148_v55, %v1147_v29  ;;  %v1149_v16 = vmax.f32 %v1117_v57, 0.0 }
 0x15a   :  { %v4626_v60 = vpack.c.bf16 %v1151_v62, %v1150_v59  ;;  %v1199_v42 = vpack.c.bf16 %v1151_v62, %v1151_v62 }
 0x15b   :  { %v1166_v61 = vpack.c.bf16 %v1149_v16, %v1148_v55  ;;  %v1198_v43 = vpack.c.bf16 %v1150_v59, %v1149_v16 }
 0x15c   :  { %1215 = vst [vmem:[#allocation2 + $0x1e8] sm:$0xf] %v1199_v42  ;;  %1245 = vst [vmem:[#allocation2 + $0x1d8] sm:$0xf] %v1199_v42  ;;  %1810 = vmatmul.mubr.bf16.gmra.mrb[88].mxu0 %v4538_v17 }
 0x15d   :  { %1817 = vmatprep.mubr.bf16.mxu0 %v4569_v26 }
 0x15e   :  { %1662 = vmatmul.mubr.bf16.gmra.mrb[60].mxu1 %v4538_v17  ;;  %v3816_v17 = vld [vmem:[%s4923_s5 + $0x20] sm:$0xff]  }
 0x15f   :  { %1669 = vmatprep.mubr.bf16.mxu1 %v4569_v26  ;;  %3480 = vmatpush3.bf16.msra.mxu1 %v3816_v17  ;;  %v3821_v26 = vld [vmem:[%s4923_s5 + $0x158] sm:$0xff]  }
 0x160   :  { %3521 = vmatprep.subr.bf16.mxu0 %v3821_v26 }
 0x164   :  { %1818 = vmatmul.mubr.bf16.gmra.mrb[92].mxu0 %v4567_v22 }
 0x165   :  { %1825 = vmatprep.mubr.bf16.mxu0 %v1193_v1 }
 0x166   :  { %1670 = vmatmul.mubr.bf16.gmra.mrb[64].mxu1 %v4567_v22  ;;  %v3820_v22 = vld [vmem:[%s4923_s5 + $0x28] sm:$0xff]  }
 0x167   :  { %1677 = vmatprep.mubr.bf16.mxu1 %v1193_v1  ;;  %v3822_v1 = vld [vmem:[%s4923_s5 + $0x118] sm:$0xff]  }
 0x168   :  { %3522 = vmatpush3.bf16.msra.mxu0 %v3822_v1 }
 0x169   :  { %3523 = vmatprep.subr.bf16.mxu0 %v3825_v53 }
 0x16c   :  { %1826 = vmatmul.mubr.bf16.gmra.mrb[96].mxu0 %v4562_v20 }
 0x16d   :  { %1833 = vmatprep.mubr.bf16.mxu0 %v1194_v13  ;;  %3524 = vmatpush3.bf16.msra.mxu0 %v3826_v56 }
 0x16e   :  { %1678 = vmatmul.mubr.bf16.gmra.mrb[68].mxu1 %v4562_v20  ;;  %v3819_v20 = vld [vmem:[%s4923_s5 + $0x68] sm:$0xff]   ;;  %3525 = vmatprep.subr.bf16.mxu0 %v3833_v18 }
 0x16f   :  { %1685 = vmatprep.mubr.bf16.mxu1 %v1194_v13  ;;  %3481 = vmatprep.subr.bf16.mxu1 %v3819_v20  ;;  %v1307_v13 = vld [vmem:[#allocation2 + $0x1e8] sm:$0xff] }
 0x170   :  { %3482 = vmatpush3.bf16.msra.mxu1 %v3820_v22 }
 0x171   :  { %3526 = vmatpush3.bf16.msra.mxu0 %v3835_v33 }
 0x172   :  { %3527 = vmatprep.subr.bf16.mxu0 %v3843_v34 }
 0x174   :  { %1834 = vmatmul.mubr.bf16.gmra.mrb[100].mxu0 %v4589_v58 }
 0x175   :  { %1841 = vmatprep.mubr.bf16.mxu0 %v1195_v5  ;;  %3528 = vmatpush3.bf16.msra.mxu0 %v3845_v48 }
 0x176   :  { %1686 = vmatmul.mubr.bf16.gmra.mrb[72].mxu1 %v4589_v58  ;;  %v3823_v58 = vld [vmem:[%s4923_s5 + $0x70] sm:$0xff]   ;;  %3529 = vmatprep.subr.bf16.mxu0 %v3849_v49 }
 0x177   :  { %1693 = vmatprep.mubr.bf16.mxu1 %v1195_v5  ;;  %3483 = vmatprep.subr.bf16.mxu1 %v3823_v58 }
 0x178   :  { %3484 = vmatpush3.bf16.msra.mxu1 %v3824_v30 }
 0x179   :  { %3485 = vmatprep.subr.bf16.mxu1 %v3827_v63  ;;  %3530 = vmatpush3.bf16.msra.mxu0 %v3850_v2 }
 0x17a   :  { %3679 = vmatprep.subr.bf16.mxu0 %v3894_v3 }
 0x17c   :  { %1842 = vmatmul.mubr.bf16.gmra.mrb[104].mxu0 %v4584_v47  ;;  %3486 = vmatpush3.bf16.msra.mxu1 %v3828_v0 }
 0x17d   :  { %1849 = vmatprep.mubr.bf16.mxu0 %v1196_v39  ;;  %3493 = vmatprep.subr.bf16.mxu1 %v3829_v46 }
 0x17e   :  { %1694 = vmatmul.mubr.bf16.gmra.mrb[76].mxu1 %v4584_v47  ;;  %v1305_v47 = vld [vmem:[#allocation2 + $0x1d8] sm:$0xff] }
 0x17f   :  { %1701 = vmatprep.mubr.bf16.mxu1 %v1196_v39 }
 0x184   :  { %1850 = vmatmul.mubr.bf16.gmra.mrb[108].mxu0 %v1164_v24 }
 0x185   :  { %1857 = vmatprep.mubr.bf16.mxu0 %v1197_v19 }
 0x186   :  { %1702 = vmatmul.mubr.bf16.gmra.mrb[80].mxu1 %v1164_v24 }
 0x187   :  { %1709 = vmatprep.mubr.bf16.mxu1 %v1197_v19 }
 0x18c   :  { %1858 = vmatmul.mubr.bf16.gmra.mrb[112].mxu0 %v1165_v8 }
 0x18d   :  { %1865 = vmatprep.mubr.bf16.mxu0 %v1198_v43 }
 0x18e   :  { %1710 = vmatmul.mubr.bf16.gmra.mrb[84].mxu1 %v1165_v8 }
 0x18f   :  { %1716 = vmatprep.mubr.bf16.mxu1 %v1198_v43 }
 0x194   :  { %1866 = vmatmul.mubr.bf16.gmra.mrb[116].mxu0 %v1166_v61 }
 0x195   :  { %1872 = vmatprep.mubr.bf16.mxu0 %v1305_v47 }
 0x196   :  { %1717 = vmatmul.mubr.bf16.gmra.mrb[88].mxu1 %v1166_v61 }
 0x197   :  { %1722 = vmatprep.mubr.bf16.mxu1 %v1307_v13 }
 0x19c   :  { %1873 = vmatmul.mubr.bf16.gmra.mrb[120].mxu0 %v4626_v60 }
 0x19d   :  { %1878 = vmatprep.mubr.bf16.mxu0 %v3884_v50 }
 0x19e   :  { %1723 = vmatmul.mubr.bf16.gmra.mrb[92].mxu1 %v4626_v60 }
 0x1a4   :  { %1879 = vmatmul.mubr.bf16.gmra.mrb[124].mxu0 %v3884_v50 }
 0x1f9   :  { %v3263_v29 = vpop.f32.mrb[32].mxu1 }
 0x1fa   :  { %v3264_v5 = vpop.f32.mrb[33].mxu1 }
 0x1fb   :  { %v3265_v6 = vadd.f32 %v3264_v5, %v3263_v29  ;;  %v3266_v36 = vpop.f32.mrb[34].mxu1 }
 0x1fc   :  { %v3267_v8 = vpop.f32.mrb[35].mxu1 }
 0x1fd   :  { %v3268_v9 = vadd.f32 %v3267_v8, %v3266_v36  ;;  %v1608_v12 = vadd.f32 %v3265_v6, %v4709_v52 }
 0x1ff   :  { %v3375_v37 = vpop.f32.mrb[64].mxu0  ;;  %v1611_v27 = vadd.f32 %v3268_v9, %v4709_v52 }
 0x200   :  { %v3376_v11 = vpop.f32.mrb[65].mxu0 }
 0x201   :  { %v3377_v24 = vadd.f32 %v3376_v11, %v3375_v37  ;;  %v3269_v39 = vpop.f32.mrb[36].mxu1  ;;  %v3378_v40 = vpop.f32.mrb[66].mxu0 }
 0x202   :  { %v3270_v41 = vpop.f32.mrb[37].mxu1  ;;  %v3379_v21 = vpop.f32.mrb[67].mxu0 }
 0x203   :  { %v1764_v35 = vadd.f32 %v3377_v24, %v1608_v12  ;;  %v3271_v45 = vadd.f32 %v3270_v41, %v3269_v39  ;;  %v3380_v38 = vadd.f32 %v3379_v21, %v3378_v40  ;;  %v3272_v23 = vpop.f32.mrb[38].mxu1 }
 0x204   :  { %v3273_v14 = vpop.f32.mrb[39].mxu1 }
 0x205   :  { %v1767_v15 = vadd.f32 %v3380_v38, %v1611_v27  ;;  %v3274_v44 = vadd.f32 %v3273_v14, %v3272_v23  ;;  %v1885_v25 = vmax.f32 %v1764_v35, 0.0  ;;  %v1616_v54 = vadd.f32 %v3271_v45, %v4709_v52 }
 0x207   :  { %v1886_v7 = vmax.f32 %v1767_v15, 0.0  ;;  %v3381_v28 = vpop.f32.mrb[68].mxu0  ;;  %v1619_v16 = vadd.f32 %v3274_v44, %v4709_v52  ;;  %v3830_v15 = vld [vmem:[%s4923_s5 + $0x80] sm:$0xff]  }
 0x208   :  { %v3382_v10 = vpop.f32.mrb[69].mxu0 }
 0x209   :  { %v1912_v4 = vmax.f32 %v1885_v25, %v1886_v7  ;;  %v3383_v55 = vadd.f32 %v3382_v10, %v3381_v28  ;;  %v3275_v57 = vpop.f32.mrb[40].mxu1  ;;  %v3384_v59 = vpop.f32.mrb[70].mxu0  ;;  %v3831_v28 = vld [vmem:[%s4923_s5 + $0xc8] sm:$0xff]  }
 0x20a   :  { %v3276_v62 = vpop.f32.mrb[41].mxu1  ;;  %v3385_v19 = vpop.f32.mrb[71].mxu0 }
 0x20b   :  { %v1772_v60 = vadd.f32 %v3383_v55, %v1616_v54  ;;  %v3277_v42 = vadd.f32 %v3276_v62, %v3275_v57  ;;  %v3386_v61 = vadd.f32 %v3385_v19, %v3384_v59  ;;  %v3278_v43 = vpop.f32.mrb[42].mxu1 }
 0x20c   :  { %v3279_v32 = vpop.f32.mrb[43].mxu1 }
 0x20d   :  { %v1887_v17 = vmax.f32 %v1772_v60, 0.0  ;;  %v1775_v31 = vadd.f32 %v3386_v61, %v1619_v16  ;;  %v3280_v51 = vadd.f32 %v3279_v32, %v3278_v43  ;;  %v1624_v1 = vadd.f32 %v3277_v42, %v4709_v52  ;;  %v3832_v16 = vld [vmem:[%s4923_s5 + $0x88] sm:$0xff]  }
 0x20f   :  { %v1913_v20 = vmax.f32 %v1912_v4, %v1887_v17  ;;  %v3387_v22 = vpop.f32.mrb[72].mxu0  ;;  %v1627_v0 = vadd.f32 %v3280_v51, %v4709_v52  ;;  %v1888_v33 = vmax.f32 %v1775_v31, 0.0  ;;  %v3834_v17 = vld [vmem:[%s4923_s5 + $0xd0] sm:$0xff]  }
 0x210   :  { %v3388_v26 = vpop.f32.mrb[73].mxu0 }
 0x211   :  { %v3389_v47 = vadd.f32 %v3388_v26, %v3387_v22  ;;  %v3281_v58 = vpop.f32.mrb[44].mxu1  ;;  %v3390_v13 = vpop.f32.mrb[74].mxu0  ;;  %v3885_v23 = vpack.c.bf16 %v1913_v20, %v1913_v20  ;;  %v3836_v26 = vld [vmem:[%s4923_s5 + $0x90] sm:$0xff]  }
 0x212   :  { %v3282_v30 = vpop.f32.mrb[45].mxu1  ;;  %v3391_v63 = vpop.f32.mrb[75].mxu0 }
 0x213   :  { %v1780_v50 = vadd.f32 %v3389_v47, %v1624_v1  ;;  %v3283_v46 = vadd.f32 %v3282_v30, %v3281_v58  ;;  %v3392_v53 = vadd.f32 %v3391_v63, %v3390_v13  ;;  %v3284_v56 = vpop.f32.mrb[46].mxu1  ;;  %v3837_v58 = vld [vmem:[%s4923_s5 + $0xd8] sm:$0xff]  }
 0x214   :  { %v3285_v18 = vpop.f32.mrb[47].mxu1 }
 0x215   :  { %v1889_v34 = vmax.f32 %v1780_v50, 0.0  ;;  %v1783_v48 = vadd.f32 %v3392_v53, %v1627_v0  ;;  %v3286_v49 = vadd.f32 %v3285_v18, %v3284_v56  ;;  %v1632_v36 = vadd.f32 %v3283_v46, %v4709_v52  ;;  %v3838_v56 = vld [vmem:[%s4923_s5 + $0x98] sm:$0xff]  }
 0x217   :  { %v1916_v2 = vmax.f32 %v1888_v33, %v1889_v34  ;;  %v1890_v29 = vmax.f32 %v1783_v48, 0.0  ;;  %v3393_v5 = vpop.f32.mrb[76].mxu0  ;;  %v1635_v12 = vadd.f32 %v3286_v49, %v4709_v52 }
 0x218   :  { %v3394_v6 = vpop.f32.mrb[77].mxu0 }
 0x219   :  { %v1917_v8 = vmax.f32 %v1916_v2, %v1890_v29  ;;  %v3395_v9 = vadd.f32 %v3394_v6, %v3393_v5  ;;  %v3287_v37 = vpop.f32.mrb[48].mxu1  ;;  %v3396_v11 = vpop.f32.mrb[78].mxu0  ;;  %v3839_v2 = vld [vmem:[%s4923_s5 + $0xe0] sm:$0xff]  }
 0x21a   :  { %v3288_v24 = vpop.f32.mrb[49].mxu1  ;;  %v3397_v39 = vpop.f32.mrb[79].mxu0 }
 0x21b   :  { %v1788_v40 = vadd.f32 %v3395_v9, %v1632_v36  ;;  %v3289_v41 = vadd.f32 %v3288_v24, %v3287_v37  ;;  %v3398_v21 = vadd.f32 %v3397_v39, %v3396_v11  ;;  %v3290_v27 = vpop.f32.mrb[50].mxu1  ;;  %v3886_v14 = vpack.c.bf16 %v1917_v8, %v1917_v8  ;;  %v3840_v9 = vld [vmem:[%s4923_s5 + $0xa0] sm:$0xff]   ;;  %v3841_v24 = vld [vmem:[%s4923_s5 + $0xe8] sm:$0xff]  }
 0x21c   :  { %v3291_v35 = vpop.f32.mrb[51].mxu1 }
 0x21d   :  { %v1791_v45 = vadd.f32 %v3398_v21, %v1635_v12  ;;  %v3292_v38 = vadd.f32 %v3291_v35, %v3290_v27  ;;  %v1891_v44 = vmax.f32 %v1788_v40, 0.0  ;;  %2600 = vmatprep.mubr.bf16.mxu1 %v3886_v14  ;;  %v1640_v54 = vadd.f32 %v3289_v41, %v4709_v52  ;;  %v3842_v14 = vld [vmem:[%s4923_s5 + $0xa8] sm:$0xff]  }
 0x21e   :  { %2601 = vmatmul.mubr.bf16.vlgmr.msra.gmra.mrb[96].mxu1 %v3885_v23 }
 0x21f   :  { %v1892_v25 = vmax.f32 %v1791_v45, 0.0  ;;  %v3399_v7 = vpop.f32.mrb[80].mxu0  ;;  %3494 = vmatpush3.bf16.msra.mxu1 %v3830_v15  ;;  %v1643_v60 = vadd.f32 %v3292_v38, %v4709_v52 }
 0x220   :  { %v3400_v10 = vpop.f32.mrb[81].mxu0  ;;  %3495 = vmatprep.subr.bf16.mxu1 %v3831_v28  ;;  %v3844_v28 = vld [vmem:[%s4923_s5 + $0xf0] sm:$0xff]  }
 0x221   :  { %v1920_v4 = vmax.f32 %v1891_v44, %v1892_v25  ;;  %v3401_v55 = vadd.f32 %v3400_v10, %v3399_v7  ;;  %v3293_v57 = vpop.f32.mrb[52].mxu1  ;;  %v3402_v59 = vpop.f32.mrb[82].mxu0 }
 0x222   :  { %v3294_v62 = vpop.f32.mrb[53].mxu1  ;;  %v3403_v19 = vpop.f32.mrb[83].mxu0 }
 0x223   :  { %v1796_v42 = vadd.f32 %v3401_v55, %v1640_v54  ;;  %v3295_v61 = vadd.f32 %v3294_v62, %v3293_v57  ;;  %v3404_v43 = vadd.f32 %v3403_v19, %v3402_v59  ;;  %v3296_v32 = vpop.f32.mrb[54].mxu1  ;;  %3496 = vmatpush3.bf16.msra.mxu1 %v3832_v16  ;;  %v3846_v57 = vld [vmem:[%s4923_s5 + $0xb0] sm:$0xff]   ;;  %v3847_v16 = vld [vmem:[%s4923_s5 + $0xf8] sm:$0xff]  }
 0x224   :  { %v3297_v31 = vpop.f32.mrb[55].mxu1  ;;  %3497 = vmatprep.subr.bf16.mxu1 %v3834_v17 }
 0x225   :  { %v1893_v51 = vmax.f32 %v1796_v42, 0.0  ;;  %v1799_v20 = vadd.f32 %v3404_v43, %v1643_v60  ;;  %v3298_v22 = vadd.f32 %v3297_v31, %v3296_v32  ;;  %v1648_v30 = vadd.f32 %v3295_v61, %v4709_v52 }
 0x227   :  { %v4736_v1 = vmax.f32 %v1920_v4, %v1893_v51  ;;  %v3405_v47 = vpop.f32.mrb[84].mxu0  ;;  %3498 = vmatpush3.bf16.msra.mxu1 %v3836_v26  ;;  %v1651_v18 = vadd.f32 %v3298_v22, %v4709_v52  ;;  %v1894_v5 = vmax.f32 %v1799_v20, 0.0  ;;  %v3848_v20 = vld [vmem:[%s4923_s5 + $0xb8] sm:$0xff]  }
 0x228   :  { %v3406_v13 = vpop.f32.mrb[85].mxu0  ;;  %3499 = vmatprep.subr.bf16.mxu1 %v3837_v58 }
 0x229   :  { %v3407_v63 = vadd.f32 %v3406_v13, %v3405_v47  ;;  %v3299_v0 = vpop.f32.mrb[56].mxu1  ;;  %v3408_v50 = vpop.f32.mrb[86].mxu0 }
 0x22a   :  { %v3300_v46 = vpop.f32.mrb[57].mxu1  ;;  %v3409_v53 = vpop.f32.mrb[87].mxu0 }
 0x22b   :  { %v1804_v33 = vadd.f32 %v3407_v63, %v1648_v30  ;;  %v3301_v34 = vadd.f32 %v3300_v46, %v3299_v0  ;;  %v3410_v48 = vadd.f32 %v3409_v53, %v3408_v50  ;;  %v3302_v49 = vpop.f32.mrb[58].mxu1  ;;  %3500 = vmatpush3.bf16.msra.mxu1 %v3838_v56  ;;  %v3851_v30 = vld [vmem:[%s4923_s5 + $0x1c0] sm:$0xff]  }
 0x22c   :  { %v3303_v29 = vpop.f32.mrb[59].mxu1  ;;  %3501 = vmatprep.subr.bf16.mxu1 %v3839_v2  ;;  %v3852_v53 = vld [vmem:[%s4923_s5 + $0x180] sm:$0xff]  }
 0x22d   :  { %v1895_v6 = vmax.f32 %v1804_v33, 0.0  ;;  %v1807_v36 = vadd.f32 %v3410_v48, %v1651_v18  ;;  %v3304_v8 = vadd.f32 %v3303_v29, %v3302_v49  ;;  %v1656_v40 = vadd.f32 %v3301_v34, %v4709_v52  ;;  %v3853_v34 = vld [vmem:[%s4923_s5 + $0x1c8] sm:$0xff]  }
 0x22e   :  { %v3888_v33 = vpack.c.bf16 %v4736_v1, %v4736_v1 }
 0x22f   :  { %v1924_v37 = vmax.f32 %v1894_v5, %v1895_v6  ;;  %v1896_v11 = vmax.f32 %v1807_v36, 0.0  ;;  %v3411_v12 = vpop.f32.mrb[88].mxu0  ;;  %v1659_v45 = vadd.f32 %v3304_v8, %v4709_v52  ;;  %3502 = vmatpush3.bf16.msra.mxu1 %v3840_v9  ;;  %v3854_v8 = vld [vmem:[%s4923_s5 + $0x188] sm:$0xff]  }
 0x230   :  { %v3412_v39 = vpop.f32.mrb[89].mxu0  ;;  %3503 = vmatprep.subr.bf16.mxu1 %v3841_v24  ;;  %v3855_v24 = vld [vmem:[%s4923_s5 + $0x1d0] sm:$0xff]  }
 0x231   :  { %v1925_v41 = vmax.f32 %v1924_v37, %v1896_v11  ;;  %v3413_v21 = vadd.f32 %v3412_v39, %v3411_v12  ;;  %v3305_v27 = vpop.f32.mrb[60].mxu1  ;;  %v3414_v35 = vpop.f32.mrb[90].mxu0 }
 0x232   :  { %v3306_v38 = vpop.f32.mrb[61].mxu1  ;;  %v3415_v23 = vpop.f32.mrb[91].mxu0 }
 0x233   :  { %v1812_v15 = vadd.f32 %v3413_v21, %v1656_v40  ;;  %v3307_v44 = vadd.f32 %v3306_v38, %v3305_v27  ;;  %v3416_v25 = vadd.f32 %v3415_v23, %v3414_v35  ;;  %v3308_v7 = vpop.f32.mrb[62].mxu1  ;;  %3504 = vmatpush3.bf16.msra.mxu1 %v3842_v14  ;;  %v3887_v55 = vpack.c.bf16 %v1925_v41, %v1925_v41  ;;  %v3856_v35 = vld [vmem:[%s4923_s5 + $0x190] sm:$0xff]   ;;  %v3857_v14 = vld [vmem:[%s4923_s5 + $0x1d8] sm:$0xff]  }
 0x234   :  { %v3309_v10 = vpop.f32.mrb[63].mxu1  ;;  %3505 = vmatprep.subr.bf16.mxu1 %v3844_v28 }
 0x235   :  { %v1815_v54 = vadd.f32 %v3416_v25, %v1659_v45  ;;  %v3310_v4 = vadd.f32 %v3309_v10, %v3308_v7  ;;  %v1897_v59 = vmax.f32 %v1812_v15, 0.0  ;;  %2640 = vmatprep.mubr.bf16.mxu1 %v3887_v55  ;;  %v1664_v42 = vadd.f32 %v3307_v44, %v4709_v52 }
 0x237   :  { %v1898_v62 = vmax.f32 %v1815_v54, 0.0  ;;  %v3417_v19 = vpop.f32.mrb[92].mxu0  ;;  %3506 = vmatpush3.bf16.msra.mxu1 %v3846_v57  ;;  %v1667_v22 = vadd.f32 %v3310_v4, %v4709_v52  ;;  %v3858_v57 = vld [vmem:[%s4923_s5 + $0x198] sm:$0xff]  }
 0x238   :  { %v3418_v60 = vpop.f32.mrb[93].mxu0  ;;  %3507 = vmatprep.subr.bf16.mxu1 %v3847_v16 }
 0x239   :  { %v1928_v61 = vmax.f32 %v1897_v59, %v1898_v62  ;;  %v3419_v43 = vadd.f32 %v3418_v60, %v3417_v19  ;;  %v3311_v32 = vpop.f32.mrb[64].mxu1  ;;  %v3420_v17 = vpop.f32.mrb[94].mxu0  ;;  %v3860_v60 = vld [vmem:[%s4923_s5 + $0x1e0] sm:$0xff]  }
 0x23a   :  { %v3312_v31 = vpop.f32.mrb[65].mxu1  ;;  %v3421_v51 = vpop.f32.mrb[95].mxu0 }
 0x23b   :  { %v1820_v26 = vadd.f32 %v3419_v43, %v1664_v42  ;;  %v3313_v47 = vadd.f32 %v3312_v31, %v3311_v32  ;;  %v3422_v58 = vadd.f32 %v3421_v51, %v3420_v17  ;;  %v3314_v13 = vpop.f32.mrb[66].mxu1  ;;  %3508 = vmatpush3.bf16.msra.mxu1 %v3848_v20  ;;  %v3859_v31 = vld [vmem:[%s4923_s5 + $0x200] sm:$0xff]  }
 0x23c   :  { %v3315_v63 = vpop.f32.mrb[67].mxu1  ;;  %3537 = vmatprep.subr.bf16.mxu1 %v3851_v30  ;;  %v3861_v51 = vld [vmem:[%s4923_s5 + $0x1a0] sm:$0xff]  }
 0x23d   :  { %v1899_v0 = vmax.f32 %v1820_v26, 0.0  ;;  %v1823_v50 = vadd.f32 %v3422_v58, %v1667_v22  ;;  %v3316_v46 = vadd.f32 %v3315_v63, %v3314_v13  ;;  %v1672_v49 = vadd.f32 %v3313_v47, %v4709_v52  ;;  %v3863_v47 = vld [vmem:[%s4923_s5 + $0x1e8] sm:$0xff]  }
 0x23e   :  { %2641 = vmatmul.mubr.bf16.vlgmr.msra.gmra.mrb[100].mxu1 %v3888_v33  ;;  %v3864_v33 = vld [vmem:[%s4923_s5 + $0x1a8] sm:$0xff]  }
 0x23f   :  { %v4780_v56 = vmax.f32 %v1928_v61, %v1899_v0  ;;  %v3423_v18 = vpop.f32.mrb[96].mxu0  ;;  %3538 = vmatpush3.bf16.msra.mxu1 %v3852_v53  ;;  %v1675_v1 = vadd.f32 %v3316_v46, %v4709_v52  ;;  %v1900_v40 = vmax.f32 %v1823_v50, 0.0 }
 0x240   :  { %v3424_v48 = vpop.f32.mrb[97].mxu0  ;;  %3539 = vmatprep.subr.bf16.mxu1 %v3853_v34 }
 0x241   :  { %v3425_v2 = vadd.f32 %v3424_v48, %v3423_v18  ;;  %v3317_v29 = vpop.f32.mrb[68].mxu1  ;;  %v3426_v5 = vpop.f32.mrb[98].mxu0  ;;  %v3889_v32 = vpack.c.bf16 %v4780_v56, %v4780_v56  ;;  %v3862_v18 = vld [vmem:[%s4923_s5 + $0x208] sm:$0xff]  }
 0x242   :  { %v3318_v6 = vpop.f32.mrb[69].mxu1  ;;  %v3427_v36 = vpop.f32.mrb[99].mxu0 }
 0x243   :  { %v1828_v9 = vadd.f32 %v3425_v2, %v1672_v49  ;;  %v3319_v37 = vadd.f32 %v3318_v6, %v3317_v29  ;;  %v3428_v11 = vadd.f32 %v3427_v36, %v3426_v5  ;;  %v3320_v12 = vpop.f32.mrb[70].mxu1  ;;  %3540 = vmatpush3.bf16.msra.mxu1 %v3854_v8  ;;  %v3866_v29 = vld [vmem:[%s4923_s5 + $0x1f0] sm:$0xff]  }
 0x244   :  { %v3321_v39 = vpop.f32.mrb[71].mxu1  ;;  %3541 = vmatprep.subr.bf16.mxu1 %v3855_v24 }
 0x245   :  { %v1901_v41 = vmax.f32 %v1828_v9, 0.0  ;;  %v1831_v21 = vadd.f32 %v3428_v11, %v1675_v1  ;;  %v3322_v27 = vadd.f32 %v3321_v39, %v3320_v12  ;;  %v1680_v44 = vadd.f32 %v3319_v37, %v4709_v52  ;;  %v3865_v1 = vld [vmem:[%s4923_s5 + $0x210] sm:$0xff]   ;;  %v3869_v12 = vld [vmem:[%s4923_s5 + $0x1f8] sm:$0xff]  }
 0x246   :  { %v3867_v9 = vld [vmem:[%s4923_s5 + $0x1b0] sm:$0xff]  }
 0x247   :  { %v1932_v45 = vmax.f32 %v1900_v40, %v1901_v41  ;;  %v1902_v38 = vmax.f32 %v1831_v21, 0.0  ;;  %v3429_v23 = vpop.f32.mrb[100].mxu0  ;;  %v1683_v54 = vadd.f32 %v3322_v27, %v4709_v52  ;;  %3542 = vmatpush3.bf16.msra.mxu1 %v3856_v35 }
 0x248   :  { %v3430_v15 = vpop.f32.mrb[101].mxu0  ;;  %3543 = vmatprep.subr.bf16.mxu1 %v3857_v14 }
 0x249   :  { %v1933_v25 = vmax.f32 %v1932_v45, %v1902_v38  ;;  %v3431_v7 = vadd.f32 %v3430_v15, %v3429_v23  ;;  %v3323_v28 = vpop.f32.mrb[72].mxu1  ;;  %v3432_v10 = vpop.f32.mrb[102].mxu0  ;;  %v3868_v38 = vld [vmem:[%s4923_s5 + $0x218] sm:$0xff]  }
 0x24a   :  { %v3324_v4 = vpop.f32.mrb[73].mxu1  ;;  %v3433_v55 = vpop.f32.mrb[103].mxu0  ;;  %v3870_v23 = vld [vmem:[%s4923_s5 + $0x1b8] sm:$0xff]  }
 0x24b   :  { %v1836_v59 = vadd.f32 %v3431_v7, %v1680_v44  ;;  %v3325_v62 = vadd.f32 %v3324_v4, %v3323_v28  ;;  %v3434_v19 = vadd.f32 %v3433_v55, %v3432_v10  ;;  %v3326_v16 = vpop.f32.mrb[74].mxu1  ;;  %v3890_v17 = vpack.c.bf16 %v1933_v25, %v1933_v25  ;;  %3544 = vmatpush3.bf16.msra.mxu1 %v3858_v57  ;;  %v3871_v55 = vld [vmem:[%s4923_s5 + $0x220] sm:$0xff]  }
 0x24c   :  { %v3327_v42 = vpop.f32.mrb[75].mxu1  ;;  %3545 = vmatprep.subr.bf16.mxu1 %v3860_v60 }
 0x24d   :  { %v1839_v61 = vadd.f32 %v3434_v19, %v1683_v54  ;;  %v3328_v43 = vadd.f32 %v3327_v42, %v3326_v16  ;;  %v1903_v20 = vmax.f32 %v1836_v59, 0.0  ;;  %2680 = vmatprep.mubr.bf16.mxu0 %v3890_v17  ;;  %v1688_v13 = vadd.f32 %v3325_v62, %v4709_v52 }
 0x24e   :  { %2681 = vmatmul.mubr.bf16.vlgmr.msra.gmra.mrb[128].mxu0 %v3889_v32 }
 0x24f   :  { %v1904_v22 = vmax.f32 %v1839_v61, 0.0  ;;  %v3435_v26 = vpop.f32.mrb[104].mxu0  ;;  %v1691_v46 = vadd.f32 %v3328_v43, %v4709_v52  ;;  %3680 = vmatpush3.bf16.msra.mxu0 %v3859_v31  ;;  %3546 = vmatpush3.bf16.msra.mxu1 %v3861_v51  ;;  %v3872_v51 = vld [vmem:[%s4923_s5 + $0x228] sm:$0xff]  }
 0x250   :  { %v3436_v58 = vpop.f32.mrb[105].mxu0  ;;  %3681 = vmatprep.subr.bf16.mxu0 %v3894_v3  ;;  %3547 = vmatprep.subr.bf16.mxu1 %v3863_v47 }
 0x251   :  { %v1936_v30 = vmax.f32 %v1903_v20, %v1904_v22  ;;  %v3437_v63 = vadd.f32 %v3436_v58, %v3435_v26  ;;  %v3329_v0 = vpop.f32.mrb[76].mxu1  ;;  %v3438_v50 = vpop.f32.mrb[106].mxu0  ;;  %3695 = vmatprep.mubr.msk.bf16.mxu0 %vm3895_vm1, %v3894_v3 }
 0x252   :  { %v3330_v53 = vpop.f32.mrb[77].mxu1  ;;  %v3439_v56 = vpop.f32.mrb[107].mxu0 }
 0x253   :  { %v1844_v34 = vadd.f32 %v3437_v63, %v1688_v13  ;;  %v3331_v48 = vadd.f32 %v3330_v53, %v3329_v0  ;;  %v3440_v49 = vadd.f32 %v3439_v56, %v3438_v50  ;;  %v3332_v2 = vpop.f32.mrb[78].mxu1  ;;  %3682 = vmatpush3.bf16.msra.mxu0 %v3862_v18  ;;  %3548 = vmatpush3.bf16.msra.mxu1 %v3864_v33  ;;  %v3873_v0 = vld [vmem:[%s4923_s5 + $0x230] sm:$0xff]  }
 0x254   :  { %v3333_v5 = vpop.f32.mrb[79].mxu1  ;;  %3683 = vmatprep.subr.bf16.mxu0 %v3894_v3  ;;  %3549 = vmatprep.subr.bf16.mxu1 %v3866_v29 }
 0x255   :  { %v1905_v6 = vmax.f32 %v1844_v34, 0.0  ;;  %v1847_v36 = vadd.f32 %v3440_v49, %v1691_v46  ;;  %v3334_v8 = vadd.f32 %v3333_v5, %v3332_v2  ;;  %v1696_v39 = vadd.f32 %v3331_v48, %v4709_v52  ;;  %v3874_v5 = vld [vmem:[%s4923_s5 + $0x238] sm:$0xff]  }
 0x257   :  { %v4840_v37 = vmax.f32 %v1936_v30, %v1905_v6  ;;  %v3441_v11 = vpop.f32.mrb[108].mxu0  ;;  %v1699_v27 = vadd.f32 %v3334_v8, %v4709_v52  ;;  %3684 = vmatpush3.bf16.msra.mxu0 %v3865_v1  ;;  %3550 = vmatpush3.bf16.msra.mxu1 %v3867_v9  ;;  %v1906_v28 = vmax.f32 %v1847_v36, 0.0 }
 0x258   :  { %v3442_v24 = vpop.f32.mrb[109].mxu0  ;;  %3685 = vmatprep.subr.bf16.mxu0 %v3894_v3  ;;  %3551 = vmatprep.subr.bf16.mxu1 %v3869_v12 }
 0x259   :  { %v3443_v40 = vadd.f32 %v3442_v24, %v3441_v11  ;;  %v3335_v41 = vpop.f32.mrb[80].mxu1  ;;  %v3444_v21 = vpop.f32.mrb[110].mxu0  ;;  %v3891_v30 = vpack.c.bf16 %v4840_v37, %v4840_v37 }
 0x25a   :  { %v3336_v35 = vpop.f32.mrb[81].mxu1  ;;  %v3445_v45 = vpop.f32.mrb[111].mxu0 }
 0x25b   :  { %v1852_v14 = vadd.f32 %v3443_v40, %v1696_v39  ;;  %v3337_v15 = vadd.f32 %v3336_v35, %v3335_v41  ;;  %v3446_v44 = vadd.f32 %v3445_v45, %v3444_v21  ;;  %v3338_v25 = vpop.f32.mrb[82].mxu1  ;;  %3686 = vmatpush3.bf16.msra.mxu0 %v3868_v38  ;;  %3552 = vmatpush3.bf16.msra.mxu1 %v3870_v23 }
 0x25c   :  { %v3339_v7 = vpop.f32.mrb[83].mxu1  ;;  %3687 = vmatprep.subr.bf16.mxu0 %v3894_v3  ;;  %3699 = vmatprep.subr.bf16.mxu1 %v3894_v3 }
 0x25d   :  { %v1907_v10 = vmax.f32 %v1852_v14, 0.0  ;;  %v1855_v54 = vadd.f32 %v3446_v44, %v1699_v27  ;;  %v3340_v4 = vadd.f32 %v3339_v7, %v3338_v25  ;;  %v1704_v16 = vadd.f32 %v3337_v15, %v4709_v52  ;;  %v3876_v14 = vld [vmem:[%s4925_s7] sm:$0xff]   ;;  %v3877_v15 = vld [vmem:[%s4925_s7 + $0x8] sm:$0xff]   ;;  %v3878_v44 = vld [vmem:[%s4925_s7 + $0x10] sm:$0xff]  }
 0x25e   :  { %v3879_v25 = vld [vmem:[%s4925_s7 + $0x18] sm:$0xff]   ;;  %v3880_v7 = vld [vmem:[%s4925_s7 + $0x20] sm:$0xff]  }
 0x25f   :  { %v1940_v57 = vmax.f32 %v1906_v28, %v1907_v10  ;;  %v1908_v59 = vmax.f32 %v1855_v54, 0.0  ;;  %v3447_v62 = vpop.f32.mrb[112].mxu0  ;;  %v1707_v32 = vadd.f32 %v3340_v4, %v4709_v52  ;;  %3688 = vmatpush3.bf16.msra.mxu0 %v3871_v55  ;;  %v3881_v28 = vld [vmem:[%s4925_s7 + $0x28] sm:$0xff]   ;;  %v3882_v10 = vld [vmem:[%s4925_s7 + $0x30] sm:$0xff]   ;;  %v3883_v54 = vld [vmem:[%s4925_s7 + $0x38] sm:$0xff]   ;;  %v14_v4 = vstv %s4926_s8 }
 0x260   :  { %v3448_v19 = vpop.f32.mrb[113].mxu0  ;;  %3689 = vmatprep.subr.bf16.mxu0 %v3894_v3  ;;  %15 = vst [vmem:[#allocation4] sm:$0x1] %v14_v4 }
 0x261   :  { %v1941_v60 = vmax.f32 %v1940_v57, %v1908_v59  ;;  %v3449_v42 = vadd.f32 %v3448_v19, %v3447_v62  ;;  %v3341_v61 = vpop.f32.mrb[84].mxu1  ;;  %v3450_v43 = vpop.f32.mrb[114].mxu0 }
 0x262   :  { %v3342_v17 = vpop.f32.mrb[85].mxu1  ;;  %v3451_v31 = vpop.f32.mrb[115].mxu0 }
 0x263   :  { %v1860_v20 = vadd.f32 %v3449_v42, %v1704_v16  ;;  %v3343_v22 = vadd.f32 %v3342_v17, %v3341_v61  ;;  %v3452_v26 = vadd.f32 %v3451_v31, %v3450_v43  ;;  %v3344_v47 = vpop.f32.mrb[86].mxu1  ;;  %v3892_v63 = vpack.c.bf16 %v1941_v60, %v1941_v60  ;;  %3690 = vmatpush3.bf16.msra.mxu0 %v3872_v51  ;;  %v3082_v16 = vld [vmem:[%s4927_s6] ss:$0 sm:$0xff] }
 0x264   :  { %v3345_v58 = vpop.f32.mrb[87].mxu1  ;;  %3691 = vmatprep.subr.bf16.mxu0 %v3894_v3 }
 0x265   :  { %v1863_v13 = vadd.f32 %v3452_v26, %v1707_v32  ;;  %v1909_v50 = vmax.f32 %v1860_v20, 0.0  ;;  %2720 = vmatprep.mubr.bf16.mxu1 %v3892_v63  ;;  %v1712_v18 = vadd.f32 %v3343_v22, %v4709_v52 }
 0x266   :  { %2721 = vmatmul.mubr.bf16.vlgmr.msra.gmra.mrb[104].mxu1 %v3891_v30 }
 0x267   :  { %v1910_v46 = vmax.f32 %v1863_v13, 0.0  ;;  %v3453_v53 = vpop.f32.mrb[116].mxu0  ;;  %3692 = vmatpush3.bf16.msra.mxu0 %v3873_v0  ;;  %3715 = vmatprep.mubr.msk.bf16.mxu1 %vm3895_vm1, %v3894_v3 }
 0x268   :  { %v3454_v56 = vpop.f32.mrb[117].mxu0  ;;  %3693 = vmatprep.subr.bf16.mxu0 %v3894_v3  ;;  %3700 = vmatpush3.bf16.msra.mxu1 %v3876_v14 }
 0x269   :  { %v1944_v33 = vmax.f32 %v1909_v50, %v1910_v46  ;;  %v3455_v34 = vadd.f32 %v3454_v56, %v3453_v53  ;;  %v3347_v48 = vpop.f32.mrb[88].mxu1  ;;  %v3456_v49 = vpop.f32.mrb[118].mxu0  ;;  %3701 = vmatprep.subr.bf16.mxu1 %v3894_v3 }
 0x26a   :  { %v3348_v2 = vpop.f32.mrb[89].mxu1  ;;  %v3457_v29 = vpop.f32.mrb[119].mxu0  ;;  %v3164_v49 = vld [vmem:[#allocation4] ss:$0 sm:$0xff] }
 0x26b   :  { %v1868_v6 = vadd.f32 %v3455_v34, %v1712_v18  ;;  %v3350_v36 = vpop.f32.mrb[90].mxu1  ;;  %3694 = vmatpush3.bf16.msra.mxu0 %v3874_v5 }
 0x26c   :  { %v3351_v52 = vpop.f32.mrb[91].mxu1  ;;  %3702 = vmatpush3.bf16.msra.mxu1 %v3877_v15 }
 0x26d   :  { %v1911_v8 = vmax.f32 %v1868_v6, 0.0  ;;  %3703 = vmatprep.subr.bf16.mxu1 %v3894_v3 }
 0x26f   :  { %v1945_v1 = vmax.f32 %v1944_v33, %v1911_v8  ;;  %v3459_v9 = vpop.f32.mrb[120].mxu0 }
 0x270   :  { %v3460_v37 = vpop.f32.mrb[121].mxu0  ;;  %3704 = vmatpush3.bf16.msra.mxu1 %v3878_v44 }
 0x271   :  { %v1946_v11 = vpack.c.bf16 %v1945_v1, %v1945_v1  ;;  %v3353_v12 = vpop.f32.mrb[92].mxu1  ;;  %v3462_v24 = vpop.f32.mrb[122].mxu0  ;;  %3705 = vmatprep.subr.bf16.mxu1 %v3894_v3 }
 0x272   :  { %v3354_v39 = vpop.f32.mrb[93].mxu1  ;;  %v3463_v40 = vpop.f32.mrb[123].mxu0 }
 0x273   :  { %1947 = vst [vmem:[#allocation3 + $0x20] sm:$0xf] %v1946_v11  ;;  %v3356_v41 = vpop.f32.mrb[94].mxu1 }
 0x274   :  { %v3357_v21 = vpop.f32.mrb[95].mxu1  ;;  %3706 = vmatpush3.bf16.msra.mxu1 %v3879_v25 }
 0x275   :  { %3707 = vmatprep.subr.bf16.mxu1 %v3894_v3 }
 0x277   :  { %v3465_v27 = vpop.f32.mrb[124].mxu0 }
 0x278   :  { %v3466_v35 = vpop.f32.mrb[125].mxu0  ;;  %3708 = vmatpush3.bf16.msra.mxu1 %v3880_v7 }
 0x279   :  { %v3468_v38 = vpop.f32.mrb[126].mxu0  ;;  %3709 = vmatprep.subr.bf16.mxu1 %v3894_v3 }
 0x27a   :  { %v3875_v45 = vld [vmem:[#allocation3 + $0x20] ss:$0 sps:$4 sm:$0xff]   ;;  %v3469_v23 = vpop.f32.mrb[127].mxu0 }
 0x27b   :  { %3696 = vmatmul.mubr.bf16.vlgmr.msra.gmra.mrb[132].mxu0 %v3875_v45 }
 0x27c   :  { %3710 = vmatpush3.bf16.msra.mxu1 %v3881_v28 }
 0x27d   :  { %3711 = vmatprep.subr.bf16.mxu1 %v3894_v3 }
 0x280   :  { %3712 = vmatpush3.bf16.msra.mxu1 %v3882_v10 }
 0x281   :  { %3713 = vmatprep.subr.bf16.mxu1 %v3894_v3 }
 0x284   :  { %3714 = vmatpush3.bf16.msra.mxu1 %v3883_v54 }
 0x2f1   :  { %v3487_v55 = vpop.f32.mrb[96].mxu1 }
 0x2f2   :  { %v3488_v57 = vpop.f32.mrb[97].mxu1 }
 0x2f3   :  { %v3489_v59 = vadd.f32 %v3488_v57, %v3487_v55  ;;  %v3490_v62 = vpop.f32.mrb[98].mxu1 }
 0x2f4   :  { %v3491_v19 = vpop.f32.mrb[99].mxu1 }
 0x2f5   :  { %v2603_v42 = vadd.f32 %v3489_v59, %v3082_v16 }
 0x311   :  { %v3509_v3 = vpop.f32.mrb[100].mxu1 }
 0x312   :  { %v3510_v60 = vpop.f32.mrb[101].mxu1 }
 0x313   :  { %v3511_v61 = vadd.f32 %v3510_v60, %v3509_v3  ;;  %v3512_v43 = vpop.f32.mrb[102].mxu1 }
 0x314   :  { %v3513_v32 = vpop.f32.mrb[103].mxu1 }
 0x315   :  { %v2643_v17 = vadd.f32 %v3511_v61, %v2603_v42 }
 0x321   :  { %v3531_v31 = vpop.f32.mrb[128].mxu0 }
 0x322   :  { %v3532_v51 = vpop.f32.mrb[129].mxu0 }
 0x323   :  { %v3533_v20 = vadd.f32 %v3532_v51, %v3531_v31  ;;  %v3534_v22 = vpop.f32.mrb[130].mxu0 }
 0x324   :  { %v3535_v26 = vpop.f32.mrb[131].mxu0 }
 0x325   :  { %v2683_v47 = vadd.f32 %v3533_v20, %v2643_v17 }
 0x339   :  { %v3553_v58 = vpop.f32.mrb[104].mxu1 }
 0x33a   :  { %v3554_v13 = vpop.f32.mrb[105].mxu1 }
 0x33b   :  { %v3555_v30 = vadd.f32 %v3554_v13, %v3553_v58  ;;  %v3556_v63 = vpop.f32.mrb[106].mxu1 }
 0x33c   :  { %v3557_v0 = vpop.f32.mrb[107].mxu1 }
 0x33d   :  { %v2723_v50 = vadd.f32 %v3555_v30, %v2683_v47 }
 0x34e   :  { %v2762_v46 = vpop.f32.mrb[132].mxu0 }
 0x34f   :  { %v2763_v53 = vadd.f32 %v2762_v46, %v2723_v50  ;;  %v3697_v56 = vpop.f32.mrb[133].mxu0 }
 0x350   :  { %v2765_v18 = vpop.f32.mrb[134].mxu0 }
 0x351   :  { %v2768_v33 = vmax.f32 %v2763_v53, 0.0  ;;  %v3698_v34 = vpop.f32.mrb[135].mxu0 }
 0x353   :  { %v2769_v48 = vpack.c.bf16 %v2768_v33, %v2768_v33 }
 0x355   :  { %3716 = vmatmul.mubr.bf16.vlgmr.msra.gmra.mrb[108].mxu1 %v2769_v48 }
 0x428   :  { %v2875_v2 = vpop.f32.mrb[108].mxu1 }
 0x429   :  { %v2876_v29 = vadd.f32 %v3164_v49, %v2875_v2  ;;  %v3717_v5 = vpop.f32.mrb[109].mxu1 }
 0x42a   :  { %v2878_v6 = vpop.f32.mrb[110].mxu1 }
 0x42b   :  { %2882 = vst.msk [vmem:[%s4928_s9] sm:$0xff] %vm2881_vm2, %v2876_v29  ;;  %v3718_v36 = vpop.f32.mrb[111].mxu1 }

</bundles_post_ra>
